<compile_context>
chip_gen: v7x
topology: tpu7x:2x2x1
jax: 0.10.0
libtpu: 0.0.40
codegen_flags: <defaults>
</compile_context>

<pallas_src>
import functools
import numpy as np
import jax
import jax.numpy as jnp
from jax.experimental import pallas as pl
from jax.experimental.pallas import tpu as pltpu

THRESH = 1.0    # snntorch Leaky default threshold (beta is irrelevant at t=0 since mem=0)
C1_HALF = 256   # conv1+pool columns per parity half (216 real + 40 zero-pad)
C2_HALF = 896   # conv2+pool columns per parity half (128 channels * 7 positions)
FC_PAD = 128    # fc output padded 5 -> 128 lanes (lane-dense stores / MXU output lanes)
N_OUT = 5
_MIB = 1024 * 1024


# ----------------------------------------------------------------------------- kernel
def snn_kernel(x_ref, m1_ref, b1_ref, m2hi_ref, m2lo_ref, b2_ref,
               wfchi_ref, wfclo_ref, bfc_ref, out_ref):
    x = x_ref[...]                                             # (TB, 40) f32
    spk0 = (x > THRESH).astype(jnp.float32)                    # lif(x, mem=0)

    # conv1 + max_pool1d(2) as f32 matmul + elementwise max of parity halves (~3.5% FLOPs)
    c1 = jnp.dot(spk0, m1_ref[...], preferred_element_type=jnp.float32) + b1_ref[...]    # (TB, 512)
    pooled1 = jnp.maximum(c1[:, :C1_HALF], c1[:, C1_HALF:])    # (TB, 256); cols >=216 are pad (=0)
    spk1 = (pooled1 > THRESH).astype(jnp.bfloat16)             # 0/1 -> exact in bf16

    # conv2 + max_pool1d(2): dominant matmul on the bf16 MXU; hi/lo bf16 weight split with
    # f32 accumulation keeps the result within ~1e-6 of the f32-weight computation.
    c2 = (jnp.dot(spk1, m2hi_ref[...], preferred_element_type=jnp.float32)
          + jnp.dot(spk1, m2lo_ref[...], preferred_element_type=jnp.float32)
          + b2_ref[...])                                       # (TB, 1792) f32
    pooled2 = jnp.maximum(c2[:, :C2_HALF], c2[:, C2_HALF:])    # (TB, 896)
    spk2 = (pooled2 > THRESH).astype(jnp.bfloat16)             # == spk2.flatten(1) order [C, L]

    # fc1 (bf16 hi/lo split; output lanes padded 5 -> 128, pad columns of W/b are zero)
    c3 = (jnp.dot(spk2, wfchi_ref[...], preferred_element_type=jnp.float32)
          + jnp.dot(spk2, wfclo_ref[...], preferred_element_type=jnp.float32)
          + bfc_ref[...])                                      # (TB, 128) f32

    # Only mem3 is written back (one lane-dense unmasked 128-col store per tile);
    # spk3 = (mem3 > 1) is recovered in the wrapper on the sliced (B, 5) result.
    out_ref[...] = c3


# ------------------------------------------------------------------- host-side lowering
def _bf16_hi_lo(w_np):
    """Split an f32 matrix into hi/lo bf16 parts: w ~= hi + lo (error ~2^-18 relative)."""
    w = jnp.asarray(w_np, jnp.float32)
    hi = w.astype(jnp.bfloat16)
    lo = (w - hi.astype(jnp.float32)).astype(jnp.bfloat16)
    return hi, lo


def build_dense_params(w1, b1, w2, b2, wfc, bfc):
    """Lower the Conv1d layers to dense matrices with pool-friendly column ordering."""
    w1 = np.asarray(w1, np.float32)   # (12, 1, 4)
    w2 = np.asarray(w2, np.float32)   # (128, 12, 4)
    b1 = np.asarray(b1, np.float32)
    b2 = np.asarray(b2, np.float32)

    # conv1: in length 40 -> 37, pool2 -> 18 (conv position 36 is dropped by the pool)
    M1 = np.zeros((40, 2 * C1_HALF), np.float32)          # halves padded 216 -> 256
    B1 = np.zeros((1, 2 * C1_HALF), np.float32)
    for par in range(2):
        for p in range(18):
            lo = 2 * p + par
            cols = par * C1_HALF + np.arange(12) * 18 + p
            B1[0, cols] = b1
            for k in range(4):
                M1[lo + k, cols] = w1[:, 0, k]

    # conv2: in length 18 -> 15, pool2 -> 7 (conv position 14 dropped). Input rows ordered [ci, l].
    M2 = np.zeros((C1_HALF, 2 * C2_HALF), np.float32)     # rows 216..255 are the spk1 padding (zero)
    B2 = np.zeros((1, 2 * C2_HALF), np.float32)
    for par in range(2):
        for p in range(7):
            lo = 2 * p + par
            cols = par * C2_HALF + np.arange(128) * 7 + p
            B2[0, cols] = b2
            for k in range(4):
                rows = np.arange(12) * 18 + (lo + k)
                M2[np.ix_(rows, cols)] = w2[:, :, k].T    # (12, 128)

    # fc1, padded to 128 lane-dense output columns (pad weights/bias are zero)
    WfcT = np.zeros((C2_HALF, FC_PAD), np.float32)
    WfcT[:, :N_OUT] = np.asarray(wfc, np.float32).T       # (896, 5) into the first 5 lanes
    Bfc = np.zeros((1, FC_PAD), np.float32)
    Bfc[0, :N_OUT] = np.asarray(bfc, np.float32)

    M2_hi, M2_lo = _bf16_hi_lo(M2)
    Wfc_hi, Wfc_lo = _bf16_hi_lo(WfcT)
    return (jnp.asarray(M1), jnp.asarray(B1),
            M2_hi, M2_lo, jnp.asarray(B2),
            Wfc_hi, Wfc_lo, jnp.asarray(Bfc))


# ---------------------------------------------------------------------------- wrapper
def _round_up(n, m):
    return ((n + m - 1) // m) * m


def _tpu_generation():
    try:
        kind = jax.devices()[0].device_kind.lower()
    except Exception:
        return None
    for gen in ("v7", "v6", "v5"):
        if gen in kind:
            return gen
    return None


# generation -> (max batch tile, explicit scoped-VMEM limit, #TensorCores per chip)
_GEN_CFG = {
    "v5": (256,  96 * _MIB, 1),   # 128 MiB physical VMEM; 16 MiB default scoped -> raise it
    "v6": (1024, 96 * _MIB, 1),   # 128 MiB physical VMEM; amortize grid overhead w/ big tiles
    "v7": (1024, 48 * _MIB, 2),   # only 64 MiB VMEM per TC; 2 TCs -> want >=2 grid steps
    None: (256,  None,      1),   # unknown generation: stay conservative, keep defaults
}


@functools.partial(jax.jit, static_argnames=("tb", "vmem_limit"))
def _forward_jit(x, dense_params, *, tb, vmem_limit):
    M1, B1, M2hi, M2lo, B2, Wfchi, Wfclo, Bfc = dense_params
    B = x.shape[0]
    Bp = _round_up(B, tb)

    x2d = x.reshape(B, 40).astype(jnp.float32)
    if Bp != B:
        # Padded rows run through the net with bias-only activations; sliced off below.
        x2d = jnp.pad(x2d, ((0, Bp - B), (0, 0)))

    grid = (Bp // tb,)

    flops_per_row = (2 * 40 * 2 * C1_HALF            # conv1 matmul (f32)
                     + 2 * 2 * C1_HALF * 2 * C2_HALF  # conv2 hi+lo bf16 matmuls
                     + 2 * 2 * C2_HALF * FC_PAD)      # fc1 hi+lo bf16 matmuls
    weight_bytes = sum(int(a.size) * a.dtype.itemsize
                       for a in (M1, B1, M2hi, M2lo, B2, Wfchi, Wfclo, Bfc))
    cost = pl.CostEstimate(
        flops=int(Bp) * int(flops_per_row),
        transcendentals=0,
        bytes_accessed=int(Bp * 40 * 4 + weight_bytes + Bp * FC_PAD * 4),
    )

    mem_pad = pl.pallas_call(
        snn_kernel,
        out_shape=jax.ShapeDtypeStruct((Bp, FC_PAD), jnp.float32),
        grid_spec=pltpu.PrefetchScalarGridSpec(
            num_scalar_prefetch=0,
            grid=grid,
            in_specs=[
                pl.BlockSpec((tb, 40), lambda i: (i, 0)),          # streamed batch tile
                pl.BlockSpec(M1.shape, lambda i: (0, 0)),          # weights: constant index
                pl.BlockSpec(B1.shape, lambda i: (0, 0)),          #  -> VMEM-resident across
                pl.BlockSpec(M2hi.shape, lambda i: (0, 0)),        #     all grid steps
                pl.BlockSpec(M2lo.shape, lambda i: (0, 0)),
                pl.BlockSpec(B2.shape, lambda i: (0, 0)),
                pl.BlockSpec(Wfchi.shape, lambda i: (0, 0)),
                pl.BlockSpec(Wfclo.shape, lambda i: (0, 0)),
                pl.BlockSpec(Bfc.shape, lambda i: (0, 0)),
            ],
            out_specs=pl.BlockSpec((tb, FC_PAD), lambda i: (i, 0)),
        ),
        compiler_params=pltpu.CompilerParams(
            dimension_semantics=("parallel",),      # megacore sharding of the batch axis (v7x)
            vmem_limit_bytes=vmem_limit),
        cost_estimate=cost,
    )(x2d, M1, B1, M2hi, M2lo, B2, Wfchi, Wfclo, Bfc)

    mem3 = mem_pad[:B, :N_OUT]
    spk3 = (mem3 > THRESH).astype(jnp.float32)      # lif3 spike recovered wrapper-side
    return spk3, mem3


def net_forward(x, dense_params, *, tb=None):
    """x: (B, 1, 40) NCL (PyTorch layout).  Returns (spk3, mem3), each (B, 5)."""
    B = x.shape[0]
    gen = _tpu_generation()
    tb_cap, vmem_limit, n_cores = _GEN_CFG.get(gen, _GEN_CFG[None])
    if tb is None:
        if n_cores > 1 and B > 8:
            # ensure the grid has >= n_cores steps so both TensorCores get work (v7x)
            tb = min(tb_cap, _round_up(-(-B // n_cores), 8))
        else:
            tb = min(tb_cap, _round_up(B, 8))
    tb = max(8, _round_up(int(tb), 8))
    return _forward_jit(x, dense_params, tb=tb, vmem_limit=vmem_limit)


# -------------------------------------------------------------------------- reference
def ref_forward(x, w1, b1, w2, b2, wfc, bfc):
    """Pure-JAX reference mirroring the PyTorch forward (hidden=False path)."""
    Bn = x.shape[0]
    spk0 = (x > THRESH).astype(jnp.float32)
    dn1 = jax.lax.conv_dimension_numbers(spk0.shape, w1.shape, ('NCH', 'OIH', 'NCH'))
    c1 = jax.lax.conv_general_dilated(spk0, w1, (1,), 'VALID',
                                      dimension_numbers=dn1) + b1[None, :, None]   # (B,12,37)
    p1 = jnp.max(c1[:, :, :36].reshape(Bn, 12, 18, 2), axis=-1)
    spk1 = (p1 > THRESH).astype(jnp.float32)
    dn2 = jax.lax.conv_dimension_numbers(spk1.shape, w2.shape, ('NCH', 'OIH', 'NCH'))
    c2 = jax.lax.conv_general_dilated(spk1, w2, (1,), 'VALID',
                                      dimension_numbers=dn2) + b2[None, :, None]   # (B,128,15)
    p2 = jnp.max(c2[:, :, :14].reshape(Bn, 128, 7, 2), axis=-1)
    spk2 = (p2 > THRESH).astype(jnp.float32)
    c3 = spk2.reshape(Bn, 896) @ wfc.T + bfc
    spk3 = (c3 > THRESH).astype(jnp.float32)
    return spk3, c3


if __name__ == "__main__":
    key = jax.random.PRNGKey(0)
    kx, k1, k2, k3, k4, k5, k6, kx2 = jax.random.split(key, 8)

    # Deterministic PyTorch-default-style init: U(-1/sqrt(fan_in), 1/sqrt(fan_in))
    def uinit(k, shape, fan_in):
        bound = 1.0 / np.sqrt(fan_in)
        return jax.random.uniform(k, shape, jnp.float32, -bound, bound)

    w1 = uinit(k1, (12, 1, 4), 1 * 4)
    b1 = uinit(k2, (12,), 1 * 4)
    w2 = uinit(k3, (128, 12, 4), 12 * 4)
    b2 = uinit(k4, (128,), 12 * 4)
    wfc = uinit(k5, (5, 896), 896)
    bfc = uinit(k6, (5,), 896)

    dense_params = build_dense_params(w1, b1, w2, b2, wfc, bfc)

    # Small-batch check (B=2, one 8-row tile).  Input scaled so spikes fire.
    B = 2
    x = 3.0 * jax.random.normal(kx, (B, 1, 40), dtype=jnp.float32)
    spk3, mem3 = net_forward(x, dense_params)
    jax.block_until_ready((spk3, mem3))
    spk3_ref, mem3_ref = ref_forward(x, w1, b1, w2, b2, wfc, bfc)
    np.testing.assert_allclose(np.asarray(mem3), np.asarray(mem3_ref), rtol=1e-4, atol=1e-4)
    np.testing.assert_allclose(np.asarray(spk3), np.asarray(spk3_ref), rtol=0, atol=0)

    # Multi-tile / padded-grid check (B=20 with an explicit 8-row tile -> grid of 3 steps).
    B2n = 20
    x2 = 3.0 * jax.random.normal(kx2, (B2n, 1, 40), dtype=jnp.float32)
    spk3b, mem3b = net_forward(x2, dense_params, tb=8)
    jax.block_until_ready((spk3b, mem3b))
    spk3b_ref, mem3b_ref = ref_forward(x2, w1, b1, w2, b2, wfc, bfc)
    np.testing.assert_allclose(np.asarray(mem3b), np.asarray(mem3b_ref), rtol=1e-4, atol=1e-4)
    np.testing.assert_allclose(np.asarray(spk3b), np.asarray(spk3b_ref), rtol=0, atol=0)

    # Default (generation-aware) tiling path on the larger batch as well.
    spk3c, mem3c = net_forward(x2, dense_params)
    jax.block_until_ready((spk3c, mem3c))
    np.testing.assert_allclose(np.asarray(mem3c), np.asarray(mem3b_ref), rtol=1e-4, atol=1e-4)
    np.testing.assert_allclose(np.asarray(spk3c), np.asarray(spk3b_ref), rtol=0, atol=0)

    # TODO(synk): the `hidden=True` branch (also returning spk2.flatten(1), mem3.flatten(1))
    # is not exposed by this wrapper; only the default (spk3, mem3) path is implemented.
    print("KERNEL_OK")
</pallas_src>

<mosaic_0001>
module attributes {stable_mosaic.version = 11 : i64} {
  func.func @snn_kernel(%arg0: i32, %arg1: memref<8x40xf32, #tpu.memory_space<vmem>>, %arg2: memref<40x512xf32, #tpu.memory_space<vmem>>, %arg3: memref<1x512xf32, #tpu.memory_space<vmem>>, %arg4: memref<256x1792xbf16, #tpu.memory_space<vmem>>, %arg5: memref<256x1792xbf16, #tpu.memory_space<vmem>>, %arg6: memref<1x1792xf32, #tpu.memory_space<vmem>>, %arg7: memref<896x128xbf16, #tpu.memory_space<vmem>>, %arg8: memref<896x128xbf16, #tpu.memory_space<vmem>>, %arg9: memref<1x128xf32, #tpu.memory_space<vmem>>, %arg10: memref<8x128xf32, #tpu.memory_space<vmem>>) attributes {dimension_semantics = [#tpu.dimension_semantics<parallel>], iteration_bounds = array<i64: 1>, scalar_prefetch = 0 : i64, scratch_operands = 0 : i64, tpu.core_type = #tpu.core_type<tc>, window_params = [{transform_indices = @transform_0, window_bounds = array<i64: 8, 40>}, {pipeline_mode = #tpu.pipeline_mode<synchronous>, transform_indices = @transform_1, window_bounds = array<i64: 40, 512>}, {pipeline_mode = #tpu.pipeline_mode<synchronous>, transform_indices = @transform_2, window_bounds = array<i64: 1, 512>}, {pipeline_mode = #tpu.pipeline_mode<synchronous>, transform_indices = @transform_3, window_bounds = array<i64: 256, 1792>}, {pipeline_mode = #tpu.pipeline_mode<synchronous>, transform_indices = @transform_4, window_bounds = array<i64: 256, 1792>}, {pipeline_mode = #tpu.pipeline_mode<synchronous>, transform_indices = @transform_5, window_bounds = array<i64: 1, 1792>}, {pipeline_mode = #tpu.pipeline_mode<synchronous>, transform_indices = @transform_6, window_bounds = array<i64: 896, 128>}, {pipeline_mode = #tpu.pipeline_mode<synchronous>, transform_indices = @transform_7, window_bounds = array<i64: 896, 128>}, {pipeline_mode = #tpu.pipeline_mode<synchronous>, transform_indices = @transform_8, window_bounds = array<i64: 1, 128>}, {transform_indices = @transform_9, window_bounds = array<i64: 8, 128>}]} {
    %c0 = arith.constant 0 : index
    %c0_0 = arith.constant 0 : index
    %0 = vector.load %arg1[%c0, %c0_0] : memref<8x40xf32, #tpu.memory_space<vmem>>, vector<8x40xf32>
    %cst = arith.constant 1.000000e+00 : f32
    %1 = vector.broadcast %cst : f32 to vector<8x40xf32>
    %2 = arith.cmpf ogt, %0, %1 : vector<8x40xf32>
    %3 = arith.extui %2 : vector<8x40xi1> to vector<8x40xi32>
    %4 = arith.sitofp %3 : vector<8x40xi32> to vector<8x40xf32>
    %c0_1 = arith.constant 0 : index
    %c0_2 = arith.constant 0 : index
    %5 = vector.load %arg2[%c0_1, %c0_2] : memref<40x512xf32, #tpu.memory_space<vmem>>, vector<40x512xf32>
    %cst_3 = arith.constant dense<0.000000e+00> : vector<8x512xf32>
    %6 = tpu.matmul %4, %5, %cst_3 {dimension_numbers = #tpu.dot_dimension_numbers<[1], [0], [0], [1], [0, 0, 1, 1], [], []>} : vector<8x40xf32>, vector<40x512xf32>, vector<8x512xf32> -> vector<8x512xf32>
    %c0_4 = arith.constant 0 : index
    %c0_5 = arith.constant 0 : index
    %7 = vector.load %arg3[%c0_4, %c0_5] : memref<1x512xf32, #tpu.memory_space<vmem>>, vector<1x512xf32>
    %8 = vector.broadcast %7 : vector<1x512xf32> to vector<8x512xf32>
    %9 = arith.addf %6, %8 : vector<8x512xf32>
    %10 = vector.extract_strided_slice %9 {offsets = [0, 0], sizes = [8, 256], strides = [1, 1]} : vector<8x512xf32> to vector<8x256xf32>
    %11 = vector.extract_strided_slice %9 {offsets = [0, 256], sizes = [8, 256], strides = [1, 1]} : vector<8x512xf32> to vector<8x256xf32>
    %12 = arith.maximumf %10, %11 : vector<8x256xf32>
    %cst_6 = arith.constant 1.000000e+00 : f32
    %13 = vector.broadcast %cst_6 : f32 to vector<8x256xf32>
    %14 = arith.cmpf ogt, %12, %13 : vector<8x256xf32>
    %15 = arith.extui %14 : vector<8x256xi1> to vector<8x256xi32>
    %16 = arith.sitofp %15 : vector<8x256xi32> to vector<8x256xf32>
    %17 = arith.truncf %16 : vector<8x256xf32> to vector<8x256xbf16>
    %c0_7 = arith.constant 0 : index
    %c0_8 = arith.constant 0 : index
    %18 = vector.load %arg4[%c0_7, %c0_8] : memref<256x1792xbf16, #tpu.memory_space<vmem>>, vector<256x1792xbf16>
    %cst_9 = arith.constant dense<0.000000e+00> : vector<8x1792xf32>
    %19 = tpu.matmul %17, %18, %cst_9 {dimension_numbers = #tpu.dot_dimension_numbers<[1], [0], [0], [1], [0, 0, 1, 1], [], []>} : vector<8x256xbf16>, vector<256x1792xbf16>, vector<8x1792xf32> -> vector<8x1792xf32>
    %c0_10 = arith.constant 0 : index
    %c0_11 = arith.constant 0 : index
    %20 = vector.load %arg5[%c0_10, %c0_11] : memref<256x1792xbf16, #tpu.memory_space<vmem>>, vector<256x1792xbf16>
    %cst_12 = arith.constant dense<0.000000e+00> : vector<8x1792xf32>
    %21 = tpu.matmul %17, %20, %cst_12 {dimension_numbers = #tpu.dot_dimension_numbers<[1], [0], [0], [1], [0, 0, 1, 1], [], []>} : vector<8x256xbf16>, vector<256x1792xbf16>, vector<8x1792xf32> -> vector<8x1792xf32>
    %22 = arith.addf %19, %21 : vector<8x1792xf32>
    %c0_13 = arith.constant 0 : index
    %c0_14 = arith.constant 0 : index
    %23 = vector.load %arg6[%c0_13, %c0_14] : memref<1x1792xf32, #tpu.memory_space<vmem>>, vector<1x1792xf32>
    %24 = vector.broadcast %23 : vector<1x1792xf32> to vector<8x1792xf32>
    %25 = arith.addf %22, %24 : vector<8x1792xf32>
    %26 = vector.extract_strided_slice %25 {offsets = [0, 0], sizes = [8, 896], strides = [1, 1]} : vector<8x1792xf32> to vector<8x896xf32>
    %27 = vector.extract_strided_slice %25 {offsets = [0, 896], sizes = [8, 896], strides = [1, 1]} : vector<8x1792xf32> to vector<8x896xf32>
    %28 = arith.maximumf %26, %27 : vector<8x896xf32>
    %cst_15 = arith.constant 1.000000e+00 : f32
    %29 = vector.broadcast %cst_15 : f32 to vector<8x896xf32>
    %30 = arith.cmpf ogt, %28, %29 : vector<8x896xf32>
    %31 = arith.extui %30 : vector<8x896xi1> to vector<8x896xi32>
    %32 = arith.sitofp %31 : vector<8x896xi32> to vector<8x896xf32>
    %33 = arith.truncf %32 : vector<8x896xf32> to vector<8x896xbf16>
    %c0_16 = arith.constant 0 : index
    %c0_17 = arith.constant 0 : index
    %34 = vector.load %arg7[%c0_16, %c0_17] : memref<896x128xbf16, #tpu.memory_space<vmem>>, vector<896x128xbf16>
    %cst_18 = arith.constant dense<0.000000e+00> : vector<8x128xf32>
    %35 = tpu.matmul %33, %34, %cst_18 {dimension_numbers = #tpu.dot_dimension_numbers<[1], [0], [0], [1], [0, 0, 1, 1], [], []>} : vector<8x896xbf16>, vector<896x128xbf16>, vector<8x128xf32> -> vector<8x128xf32>
    %c0_19 = arith.constant 0 : index
    %c0_20 = arith.constant 0 : index
    %36 = vector.load %arg8[%c0_19, %c0_20] : memref<896x128xbf16, #tpu.memory_space<vmem>>, vector<896x128xbf16>
    %cst_21 = arith.constant dense<0.000000e+00> : vector<8x128xf32>
    %37 = tpu.matmul %33, %36, %cst_21 {dimension_numbers = #tpu.dot_dimension_numbers<[1], [0], [0], [1], [0, 0, 1, 1], [], []>} : vector<8x896xbf16>, vector<896x128xbf16>, vector<8x128xf32> -> vector<8x128xf32>
    %38 = arith.addf %35, %37 : vector<8x128xf32>
    %c0_22 = arith.constant 0 : index
    %c0_23 = arith.constant 0 : index
    %39 = vector.load %arg9[%c0_22, %c0_23] : memref<1x128xf32, #tpu.memory_space<vmem>>, vector<1x128xf32>
    %40 = vector.broadcast %39 : vector<1x128xf32> to vector<8x128xf32>
    %41 = arith.addf %38, %40 : vector<8x128xf32>
    %c0_24 = arith.constant 0 : index
    %c0_25 = arith.constant 0 : index
    %42 = vector.load %arg10[%c0_24, %c0_25] : memref<8x128xf32, #tpu.memory_space<vmem>>, vector<8x128xf32>
    tpu.vector_store %arg10[%c0_24, %c0_25], %41 {strides = array<i32>} : memref<8x128xf32, #tpu.memory_space<vmem>>, vector<8x128xf32>,
    return
  }
  func.func @transform_0(%arg0: i32) -> (i32, i32) {
    %c0_i32 = arith.constant 0 : i32
    %c0_i32_0 = arith.constant 0 : i32
    return %arg0, %c0_i32 : i32, i32
  }
  func.func @transform_1(%arg0: i32) -> (i32, i32) {
    %c0_i32 = arith.constant 0 : i32
    %c0_i32_0 = arith.constant 0 : i32
    %c0_i32_1 = arith.constant 0 : i32
    return %c0_i32, %c0_i32_0 : i32, i32
  }
  func.func @transform_2(%arg0: i32) -> (i32, i32) {
    %c0_i32 = arith.constant 0 : i32
    %c0_i32_0 = arith.constant 0 : i32
    %c0_i32_1 = arith.constant 0 : i32
    return %c0_i32, %c0_i32_0 : i32, i32
  }
  func.func @transform_3(%arg0: i32) -> (i32, i32) {
    %c0_i32 = arith.constant 0 : i32
    %c0_i32_0 = arith.constant 0 : i32
    %c0_i32_1 = arith.constant 0 : i32
    return %c0_i32, %c0_i32_0 : i32, i32
  }
  func.func @transform_4(%arg0: i32) -> (i32, i32) {
    %c0_i32 = arith.constant 0 : i32
    %c0_i32_0 = arith.constant 0 : i32
    %c0_i32_1 = arith.constant 0 : i32
    return %c0_i32, %c0_i32_0 : i32, i32
  }
  func.func @transform_5(%arg0: i32) -> (i32, i32) {
    %c0_i32 = arith.constant 0 : i32
    %c0_i32_0 = arith.constant 0 : i32
    %c0_i32_1 = arith.constant 0 : i32
    return %c0_i32, %c0_i32_0 : i32, i32
  }
  func.func @transform_6(%arg0: i32) -> (i32, i32) {
    %c0_i32 = arith.constant 0 : i32
    %c0_i32_0 = arith.constant 0 : i32
    %c0_i32_1 = arith.constant 0 : i32
    return %c0_i32, %c0_i32_0 : i32, i32
  }
  func.func @transform_7(%arg0: i32) -> (i32, i32) {
    %c0_i32 = arith.constant 0 : i32
    %c0_i32_0 = arith.constant 0 : i32
    %c0_i32_1 = arith.constant 0 : i32
    return %c0_i32, %c0_i32_0 : i32, i32
  }
  func.func @transform_8(%arg0: i32) -> (i32, i32) {
    %c0_i32 = arith.constant 0 : i32
    %c0_i32_0 = arith.constant 0 : i32
    %c0_i32_1 = arith.constant 0 : i32
    return %c0_i32, %c0_i32_0 : i32, i32
  }
  func.func @transform_9(%arg0: i32) -> (i32, i32) {
    %c0_i32 = arith.constant 0 : i32
    %c0_i32_0 = arith.constant 0 : i32
    return %arg0, %c0_i32 : i32, i32
  }
}

</mosaic_0001>

<bundles_post_ra>
// kernel: _forward_jit.1
= control target key start
LH: loop header
LB: loop body
LE: loop exit
PB: predicated region body
PF: predicated region fallthrough
CT: control target
= control target key end

     0   :  { %14 = vsyncpa [#allocation3], 0  ;;  %s7225_s0 = inlined_call_operand.vmem [shape: f32[8,40], index: 0, kind: input, shape index: {}]   ;;  %s7226_s1 = inlined_call_operand.hbm [shape: f32[40,512], index: 1, kind: input, shape index: {}]   ;;  %s7227_s2 = inlined_call_operand.vmem [shape: f32[1,512], index: 2, kind: input, shape index: {}]   ;;  %s7228_s3 = inlined_call_operand.hbm [shape: bf16[256,1792], index: 3, kind: input, shape index: {}]   ;;  %s7229_s4 = inlined_call_operand.hbm [shape: bf16[256,1792], index: 4, kind: input, shape index: {}]   ;;  %s7230_s5 = inlined_call_operand.vmem [shape: f32[1,1792], index: 5, kind: input, shape index: {}]   ;;  %s7231_s6 = inlined_call_operand.hbm [shape: bf16[896,128], index: 6, kind: input, shape index: {}]   ;;  %s7232_s7 = inlined_call_operand.hbm [shape: bf16[896,128], index: 7, kind: input, shape index: {}]   ;;  %s7233_s8 = inlined_call_operand.vmem [shape: f32[1,128], index: 8, kind: input, shape index: {}]   ;;  %s7234_s9 = inlined_call_operand.vmem [shape: f32[8,128], index: 9, kind: output, shape index: {}]  }
   0x1   :  { %15 = vsyncpa [#allocation5], 0 }
   0x2   :  { %16 = vsyncpa [#allocation8], 0  ;;  %s6697_s30 = smov [#allocation4]   ;;  %s6581_s13 = scalar_lea.hbm %s7228_s3, 28672 }
   0x3   :  { %s38_s10 = sshll.u32 %s6697_s30, 4  ;;  %p6582_p0 = scmp.ne.s32.totalorder %s7228_s3, %s6581_s13  ;;  %s39_s10 = int_to_ptr.vmem [resolvable:$true] %s38_s10 }
   0x4   :  { %p6585_p1 = scmp.lt.u32.totalorder %s6581_s13, %s7228_s3 }
   0x6   :  { %p6587_p2 = pnand %p6585_p1, %p6582_p0 }
   0x8   :  { %6590 = shalt.err (!%p6587_p2)
}
   0x9   :  { %s6591_s18 = scalar_lea.vmem %s39_s10, 28672  ;;  %p6596_p4 = scmp.lt.s32.totalorder %s39_s10, %s39_s10 }
   0xa   :  { %p6592_p3 = scmp.ne.s32.totalorder %s39_s10, %s6591_s18  ;;  %p6597_p5 = scmp.lt.s32.totalorder %s6591_s18, %s6591_s18 }
   0xc   :  { %p6598_p6 = por %p6597_p5, %p6596_p4 }
   0xe   :  { %p6599_p7 = pnand %p6598_p6, %p6592_p3 }
  0x10   :  { %6602 = shalt.err (!%p6599_p7)
}
  0x11   :  { %s6698_s19 = smov 896   ;;  %s6699_s20 = smov 56  }
  0x12   :  { %44 = dma.hbm_to_vmem [thread:$0]  %s7228_s3, 28672, %s39_s10, [#allocation5], %s6698_s19, %s6698_s19, %s6699_s20  }
  0x13   :  { %s6700_s23 = smov [#allocation7]   ;;  %s6603_s27 = scalar_lea.hbm %s7231_s6, 7168 }
  0x14   :  { %s64_s24 = sshll.u32 %s6700_s23, 4  ;;  %p6604_p8 = scmp.ne.s32.totalorder %s7231_s6, %s6603_s27  ;;  %s65_s24 = int_to_ptr.vmem [resolvable:$true] %s64_s24 }
  0x15   :  { %p6607_p9 = scmp.lt.u32.totalorder %s6603_s27, %s7231_s6 }
  0x17   :  { %p6609_p10 = pnand %p6607_p9, %p6604_p8 }
  0x19   :  { %6612 = shalt.err (!%p6609_p10)
}
  0x1a   :  { %s6613_s12 = scalar_lea.vmem %s65_s24, 7168  ;;  %p6618_p12 = scmp.lt.s32.totalorder %s65_s24, %s65_s24 }
  0x1b   :  { %p6614_p11 = scmp.ne.s32.totalorder %s65_s24, %s6613_s12  ;;  %p6619_p13 = scmp.lt.s32.totalorder %s6613_s12, %s6613_s12 }
  0x1d   :  { %p6620_p0 = por %p6619_p13, %p6618_p12 }
  0x1f   :  { %p6621_p1 = pnand %p6620_p0, %p6614_p11 }
  0x21   :  { %6624 = shalt.err (!%p6621_p1)
}
  0x22   :  { %s6701_s3 = smov 64   ;;  %s6702_s10 = smov 4  }
  0x23   :  { %70 = dma.hbm_to_vmem [thread:$0]  %s7231_s6, 7168, %s65_s24, [#allocation8], %s6701_s3, %s6701_s3, %s6702_s10  }
  0x24   :  { %s6703_s15 = smov [#allocation2]   ;;  %s6625_s21 = scalar_lea.hbm %s7226_s1, 2560 }
  0x25   :  { %s24_s16 = sshll.u32 %s6703_s15, 4  ;;  %p6626_p2 = scmp.ne.s32.totalorder %s7226_s1, %s6625_s21  ;;  %s25_s16 = int_to_ptr.vmem [resolvable:$true] %s24_s16 }
  0x26   :  { %p6629_p3 = scmp.lt.u32.totalorder %s6625_s21, %s7226_s1 }
  0x28   :  { %p6631_p4 = pnand %p6629_p3, %p6626_p2 }
  0x2a   :  { %6634 = shalt.err (!%p6631_p4)
}
  0x2b   :  { %s6635_s27 = scalar_lea.vmem %s25_s16, 2560  ;;  %p6640_p6 = scmp.lt.s32.totalorder %s25_s16, %s25_s16 }
  0x2c   :  { %p6636_p5 = scmp.ne.s32.totalorder %s25_s16, %s6635_s27  ;;  %p6641_p7 = scmp.lt.s32.totalorder %s6635_s27, %s6635_s27 }
  0x2e   :  { %p6642_p8 = por %p6641_p7, %p6640_p6 }
  0x30   :  { %p6643_p9 = pnand %p6642_p8, %p6636_p5 }
  0x32   :  { %6646 = shalt.err (!%p6643_p9)
}
  0x33   :  { %s6704_s6 = smov 512   ;;  %s6705_s24 = smov 32  }
  0x34   :  { %30 = dma.hbm_to_vmem [thread:$0]  %s7226_s1, 2560, %s25_s16, [#allocation3], %s6704_s6, %s6704_s6, %s6705_s24  }
  0x35   :  { %s6706_s30 = smov [#allocation6]   ;;  %s6707_s12 = smov [#allocation9]  }
  0x36   :  { %s50_s11 = sshll.u32 %s6706_s30, 4  ;;  %s76_s13 = sshll.u32 %s6707_s12, 4  ;;  %s51_s11 = int_to_ptr.vmem [resolvable:$true] %s50_s11  ;;  %s77_s13 = int_to_ptr.vmem [resolvable:$true] %s76_s13 }
  0x37   :  { %s6647_s17 = scalar_lea.hbm %s7229_s4, 28672 }
  0x38   :  { %p6648_p10 = scmp.ne.s32.totalorder %s7229_s4, %s6647_s17  ;;  %p6651_p11 = scmp.lt.u32.totalorder %s6647_s17, %s7229_s4 }
  0x3a   :  { %p6653_p12 = pnand %p6651_p11, %p6648_p10 }
  0x3c   :  { %6656 = shalt.err (!%p6653_p12)
}
  0x3d   :  { %s6657_s1 = scalar_lea.vmem %s51_s11, 28672  ;;  %p6662_p0 = scmp.lt.s32.totalorder %s51_s11, %s51_s11 }
  0x3e   :  { %p6658_p13 = scmp.ne.s32.totalorder %s51_s11, %s6657_s1  ;;  %p6663_p1 = scmp.lt.s32.totalorder %s6657_s1, %s6657_s1 }
  0x40   :  { %p6664_p2 = por %p6663_p1, %p6662_p0 }
  0x42   :  { %p6665_p3 = pnand %p6664_p2, %p6658_p13 }
  0x44   :  { %6668 = shalt.err (!%p6665_p3)
}
  0x45   :  { %56 = dma.hbm_to_vmem [thread:$0]  %s7229_s4, 28672, %s51_s11, [#allocation5], %s6698_s19, %s6698_s19, %s6699_s20  }
  0x46   :  { %s6669_s6 = scalar_lea.hbm %s7232_s7, 7168 }
  0x47   :  { %p6670_p4 = scmp.ne.s32.totalorder %s7232_s7, %s6669_s6  ;;  %p6673_p5 = scmp.lt.u32.totalorder %s6669_s6, %s7232_s7 }
  0x49   :  { %p6675_p6 = pnand %p6673_p5, %p6670_p4 }
  0x4b   :  { %6678 = shalt.err (!%p6675_p6)
}
  0x4c   :  { %s6679_s12 = scalar_lea.vmem %s77_s13, 7168  ;;  %p6684_p8 = scmp.lt.s32.totalorder %s77_s13, %s77_s13 }
  0x4d   :  { %p6680_p7 = scmp.ne.s32.totalorder %s77_s13, %s6679_s12  ;;  %p6685_p9 = scmp.lt.s32.totalorder %s6679_s12, %s6679_s12 }
  0x4f   :  { %p6686_p10 = por %p6685_p9, %p6684_p8 }
  0x51   :  { %p6687_p11 = pnand %p6686_p10, %p6680_p7 }
  0x53   :  { %6690 = shalt.err (!%p6687_p11)
}
  0x54   :  { %82 = dma.hbm_to_vmem [thread:$0]  %s7232_s7, 7168, %s77_s13, [#allocation8], %s6701_s3, %s6701_s3, %s6702_s10  }
  0x55   :  { %6691 = dma.done.wait [#allocation3], 2560  }
  0x56   :  { %6692 = vsyncadd [#allocation3], 4294964736 }
  0x57   :  { %6693 = dma.done.wait [#allocation5], 57344  }
  0x58   :  { %6694 = vsyncadd [#allocation5], 4294909952 }
  0x59   :  { %6695 = dma.done.wait [#allocation8], 14336  }
  0x5a   :  { %6696 = vsyncadd [#allocation8], 4294952960  ;;  %v6708_v0 = vmov 0.0   ;;  %v106_v1 = vld [vmem:[#allocation2 + $0x8] sm:$0xff]  ;;  %v108_v3 = vld [vmem:[#allocation2 + $0x18] sm:$0xff]  ;;  %vm147_vm1 = vcmask 326656  }
  0x5b   :  { %215 = vmatprep.mubr.f32.mxu0 %v6708_v0  ;;  %286 = vmatprep.mubr.f32.mxu1 %v6708_v0  ;;  %v110_v2 = vld [vmem:[#allocation2 + $0x28] sm:$0xff]  ;;  %v112_v5 = vld [vmem:[#allocation2 + $0x38] sm:$0xff]  ;;  %v105_v6 = vld [vmem:[#allocation2] sm:$0xff] }
  0x5c   :  { %v5767_v4 = vpack.c.bf16 %v110_v2, %v106_v1  ;;  %v109_v7 = vld [vmem:[#allocation2 + $0x20] sm:$0xff]  ;;  %v5775_v8 = vpack.c.bf16 %v112_v5, %v108_v3  ;;  %v107_v10 = vld [vmem:[#allocation2 + $0x10] sm:$0xff]  ;;  %v114_v12 = vld [vmem:[#allocation2 + $0x48] sm:$0xff] }
  0x5d   :  { %v5769_v9 = vpack.c.bf16 %v109_v7, %v105_v6  ;;  %v111_v11 = vld [vmem:[#allocation2 + $0x30] sm:$0xff]  ;;  %v118_v14 = vld [vmem:[#allocation2 + $0x68] sm:$0xff]  ;;  %v116_v15 = vld [vmem:[#allocation2 + $0x58] sm:$0xff] }
  0x5e   :  { %5768 = vmatprep.subr.bf16.mxu0 %v5767_v4  ;;  %v5777_v13 = vpack.c.bf16 %v111_v11, %v107_v10  ;;  %v120_v16 = vld [vmem:[#allocation2 + $0x78] sm:$0xff]  ;;  %5776 = vmatprep.subr.bf16.mxu1 %v5775_v8  ;;  %v5771_v17 = vpack.c.bf16 %v118_v14, %v114_v12  ;;  %v113_v19 = vld [vmem:[#allocation2 + $0x40] sm:$0xff]  ;;  %v115_v21 = vld [vmem:[#allocation2 + $0x50] sm:$0xff] }
  0x5f   :  { %5770 = vmatpush1.bf16.msra.mxu0 %v5769_v9  ;;  %v5779_v18 = vpack.c.bf16 %v120_v16, %v116_v15  ;;  %v117_v20 = vld [vmem:[#allocation2 + $0x60] sm:$0xff]  ;;  %v119_v23 = vld [vmem:[#allocation2 + $0x70] sm:$0xff]  ;;  %v122_v25 = vld [vmem:[#allocation2 + $0x88] sm:$0xff] }
  0x60   :  { %5778 = vmatpush1.bf16.msra.mxu1 %v5777_v13  ;;  %v5773_v22 = vpack.c.bf16 %v117_v20, %v113_v19  ;;  %5772 = vmatprep.subr.bf16.mxu0 %v5771_v17  ;;  %v5781_v24 = vpack.c.bf16 %v119_v23, %v115_v21  ;;  %v101_v26 = vld [vmem:[%s7225_s0] sm:$0xff]  ;;  %v124_v27 = vld [vmem:[#allocation2 + $0x98] sm:$0xff]  ;;  %v123_v29 = vld [vmem:[#allocation2 + $0x90] sm:$0xff] }
  0x61   :  { %5780 = vmatprep.subr.bf16.mxu1 %v5779_v18  ;;  %vm102_vm0 = vcmp.gt.f32.partialorder %v101_v26, 1.0  ;;  %v121_v28 = vld [vmem:[#allocation2 + $0x80] sm:$0xff]  ;;  %v5805_v35 = vld [vmem:[#allocation6 + $0x74] ss:$56 sps:$4 sm:$0xff]   ;;  %v5803_v37 = vld [vmem:[#allocation6 + $0x70] ss:$56 sps:$4 sm:$0xff]  }
  0x62   :  { %v5797_v30 = vld [vmem:[#allocation6] ss:$56 sps:$4 sm:$0xff]   ;;  %v4920_v31 = vsel %vm102_vm0, 1.0, %v6708_v0  ;;  %v5799_v32 = vld [vmem:[#allocation6 + $0x4] ss:$56 sps:$4 sm:$0xff]  }
  0x63   :  { %5774 = vmatpush1.bf16.msra.mxu0 %v5773_v22  ;;  %v5800_v33 = vld [vmem:[#allocation6 + $0x8] ss:$56 sps:$4 sm:$0xff]   ;;  %v5802_v34 = vld [vmem:[#allocation6 + $0xc] ss:$56 sps:$4 sm:$0xff]   ;;  %v5808_v36 = vld [vmem:[#allocation6 + $0x7c] ss:$56 sps:$4 sm:$0xff]  }
  0x64   :  { %5782 = vmatpush1.bf16.msra.mxu1 %v5781_v24  ;;  %159 = vmatprep.subr.mxu0 %v122_v25  ;;  %v5806_v38 = vld [vmem:[#allocation6 + $0x78] ss:$56 sps:$4 sm:$0xff]   ;;  %v5811_v39 = vld [vmem:[#allocation6 + $0xe4] ss:$56 sps:$4 sm:$0xff]   ;;  %v5812_v42 = vld [vmem:[#allocation6 + $0xe8] ss:$56 sps:$4 sm:$0xff]  }
  0x65   :  { %230 = vmatprep.subr.mxu1 %v124_v27  ;;  %v5814_v40 = vld [vmem:[#allocation6 + $0xec] ss:$56 sps:$4 sm:$0xff]   ;;  %v5809_v41 = vld [vmem:[#allocation6 + $0xe0] ss:$56 sps:$4 sm:$0xff]   ;;  %v5820_v44 = vld [vmem:[#allocation6 + $0x15c] ss:$56 sps:$4 sm:$0xff]  }
  0x66   :  { %v5817_v43 = vld [vmem:[#allocation6 + $0x154] ss:$56 sps:$4 sm:$0xff]   ;;  %v5815_v45 = vld [vmem:[#allocation6 + $0x150] ss:$56 sps:$4 sm:$0xff]   ;;  %v5823_v47 = vld [vmem:[#allocation6 + $0x1c4] ss:$56 sps:$4 sm:$0xff]  }
  0x67   :  { %160 = vmatpush1.msra.mxu0 %v121_v28  ;;  %v5818_v46 = vld [vmem:[#allocation6 + $0x158] ss:$56 sps:$4 sm:$0xff]   ;;  %v5826_v48 = vld [vmem:[#allocation6 + $0x1cc] ss:$56 sps:$4 sm:$0xff]   ;;  %v5824_v50 = vld [vmem:[#allocation6 + $0x1c8] ss:$56 sps:$4 sm:$0xff]  }
  0x68   :  { %231 = vmatpush1.msra.mxu1 %v123_v29  ;;  %4921 = vmatmul.mubr.msk.f32.vlgmr.msra.gmra.mrb[0].mxu0 %vm147_vm1, %v4920_v31  ;;  %v5821_v49 = vld [vmem:[#allocation6 + $0x1c0] ss:$56 sps:$4 sm:$0xff]   ;;  %v5829_v51 = vld [vmem:[#allocation6 + $0x234] ss:$56 sps:$4 sm:$0xff]   ;;  %v5827_v53 = vld [vmem:[#allocation6 + $0x230] ss:$56 sps:$4 sm:$0xff]  }
  0x69   :  { %4922 = vmatmul.mubr.msk.f32.vlgmr.msra.gmra.mrb[0].mxu1 %vm147_vm1, %v4920_v31  ;;  %1871 = vmatprep.subr.bf16.mxu0 %v5799_v32  ;;  %v5832_v52 = vld [vmem:[#allocation6 + $0x23c] ss:$56 sps:$4 sm:$0xff]   ;;  %v5830_v54 = vld [vmem:[#allocation6 + $0x238] ss:$56 sps:$4 sm:$0xff]   ;;  %v5838_v56 = vld [vmem:[#allocation6 + $0x2ac] ss:$56 sps:$4 sm:$0xff]  }
  0x6a   :  { %1912 = vmatprep.subr.bf16.mxu1 %v5802_v34  ;;  %1872 = vmatpush1.bf16.msra.mxu0 %v5797_v30  ;;  %v5835_v55 = vld [vmem:[#allocation6 + $0x2a4] ss:$56 sps:$4 sm:$0xff]   ;;  %v5833_v57 = vld [vmem:[#allocation6 + $0x2a0] ss:$56 sps:$4 sm:$0xff]   ;;  %v5841_v59 = vld [vmem:[#allocation6 + $0x314] ss:$56 sps:$4 sm:$0xff]   ;;  %v127_v34 = vlaneseq }
  0x6b   :  { %1913 = vmatpush1.bf16.msra.mxu1 %v5800_v33  ;;  %1873 = vmatprep.subr.bf16.mxu0 %v5805_v35  ;;  %v5836_v58 = vld [vmem:[#allocation6 + $0x2a8] ss:$56 sps:$4 sm:$0xff]   ;;  %v5844_v60 = vld [vmem:[#allocation6 + $0x31c] ss:$56 sps:$4 sm:$0xff]   ;;  %v5842_v62 = vld [vmem:[#allocation6 + $0x318] ss:$56 sps:$4 sm:$0xff]  }
  0x6c   :  { %1914 = vmatprep.subr.bf16.mxu1 %v5808_v36  ;;  %v5839_v61 = vld [vmem:[#allocation6 + $0x310] ss:$56 sps:$4 sm:$0xff]   ;;  %v5847_v63 = vld [vmem:[#allocation6 + $0x384] ss:$56 sps:$4 sm:$0xff]   ;;  %v5845_v2 = vld [vmem:[#allocation6 + $0x380] ss:$56 sps:$4 sm:$0xff]  }
  0x6d   :  { %v5850_v1 = vld [vmem:[#allocation6 + $0x38c] ss:$56 sps:$4 sm:$0xff]   ;;  %v5848_v3 = vld [vmem:[#allocation6 + $0x388] ss:$56 sps:$4 sm:$0xff]   ;;  %v5856_v5 = vld [vmem:[#allocation6 + $0x3fc] ss:$56 sps:$4 sm:$0xff]  }
  0x6e   :  { %1874 = vmatpush1.bf16.msra.mxu0 %v5803_v37  ;;  %v5853_v4 = vld [vmem:[#allocation6 + $0x3f4] ss:$56 sps:$4 sm:$0xff]   ;;  %v5851_v6 = vld [vmem:[#allocation6 + $0x3f0] ss:$56 sps:$4 sm:$0xff]   ;;  %v5859_v8 = vld [vmem:[#allocation6 + $0x464] ss:$56 sps:$4 sm:$0xff]  }
  0x6f   :  { %1915 = vmatpush1.bf16.msra.mxu1 %v5806_v38  ;;  %1875 = vmatprep.subr.bf16.mxu0 %v5811_v39  ;;  %v5854_v7 = vld [vmem:[#allocation6 + $0x3f8] ss:$56 sps:$4 sm:$0xff]   ;;  %v5862_v9 = vld [vmem:[#allocation6 + $0x46c] ss:$56 sps:$4 sm:$0xff]   ;;  %v5860_v11 = vld [vmem:[#allocation6 + $0x468] ss:$56 sps:$4 sm:$0xff]  }
  0x70   :  { %1916 = vmatprep.subr.bf16.mxu1 %v5814_v40  ;;  %v5857_v10 = vld [vmem:[#allocation6 + $0x460] ss:$56 sps:$4 sm:$0xff]   ;;  %v5865_v12 = vld [vmem:[#allocation6 + $0x4d4] ss:$56 sps:$4 sm:$0xff]   ;;  %v5863_v14 = vld [vmem:[#allocation6 + $0x4d0] ss:$56 sps:$4 sm:$0xff]  }
  0x71   :  { %v5868_v13 = vld [vmem:[#allocation6 + $0x4dc] ss:$56 sps:$4 sm:$0xff]   ;;  %v5866_v15 = vld [vmem:[#allocation6 + $0x4d8] ss:$56 sps:$4 sm:$0xff]   ;;  %v5874_v17 = vld [vmem:[#allocation6 + $0x54c] ss:$56 sps:$4 sm:$0xff]  }
  0x72   :  { %1876 = vmatpush1.bf16.msra.mxu0 %v5809_v41  ;;  %v5871_v16 = vld [vmem:[#allocation6 + $0x544] ss:$56 sps:$4 sm:$0xff]   ;;  %v5869_v18 = vld [vmem:[#allocation6 + $0x540] ss:$56 sps:$4 sm:$0xff]   ;;  %v5877_v20 = vld [vmem:[#allocation6 + $0x5b4] ss:$56 sps:$4 sm:$0xff]  }
  0x73   :  { %1917 = vmatpush1.bf16.msra.mxu1 %v5812_v42  ;;  %1877 = vmatprep.subr.bf16.mxu0 %v5817_v43  ;;  %v5872_v19 = vld [vmem:[#allocation6 + $0x548] ss:$56 sps:$4 sm:$0xff]   ;;  %v5880_v21 = vld [vmem:[#allocation6 + $0x5bc] ss:$56 sps:$4 sm:$0xff]   ;;  %v5878_v23 = vld [vmem:[#allocation6 + $0x5b8] ss:$56 sps:$4 sm:$0xff]  }
  0x74   :  { %1918 = vmatprep.subr.bf16.mxu1 %v5820_v44  ;;  %v5875_v22 = vld [vmem:[#allocation6 + $0x5b0] ss:$56 sps:$4 sm:$0xff]   ;;  %v5883_v24 = vld [vmem:[#allocation6 + $0x624] ss:$56 sps:$4 sm:$0xff]   ;;  %v5881_v26 = vld [vmem:[#allocation6 + $0x620] ss:$56 sps:$4 sm:$0xff]  }
  0x75   :  { %v5886_v25 = vld [vmem:[#allocation6 + $0x62c] ss:$56 sps:$4 sm:$0xff]   ;;  %v5884_v27 = vld [vmem:[#allocation6 + $0x628] ss:$56 sps:$4 sm:$0xff]   ;;  %v5892_v29 = vld [vmem:[#allocation6 + $0x69c] ss:$56 sps:$4 sm:$0xff]  }
  0x76   :  { %1878 = vmatpush1.bf16.msra.mxu0 %v5815_v45  ;;  %v5889_v28 = vld [vmem:[#allocation6 + $0x694] ss:$56 sps:$4 sm:$0xff]   ;;  %v5887_v30 = vld [vmem:[#allocation6 + $0x690] ss:$56 sps:$4 sm:$0xff]   ;;  %v6839_v35 = vshrl.u32 %v127_v34, 7 }
  0x77   :  { %1919 = vmatpush1.bf16.msra.mxu1 %v5818_v46  ;;  %1879 = vmatprep.subr.bf16.mxu0 %v5823_v47  ;;  %v5890_v31 = vld [vmem:[#allocation6 + $0x698] ss:$56 sps:$4 sm:$0xff]   ;;  %v5895_v32 = vld [vmem:[#allocation6 + $0x14] ss:$56 sps:$4 sm:$0xff]   ;;  %v125_v36 = vld [vmem:[%s7227_s2] sm:$0xf] }
  0x78   :  { %1920 = vmatprep.subr.bf16.mxu1 %v5826_v48  ;;  %v5898_v33 = vld [vmem:[#allocation6 + $0x1c] ss:$56 sps:$4 sm:$0xff]   ;;  %v6845_v37 = vsub.s32 0, %v6839_v35  ;;  %v6848_v38 = vsub.s32 2, %v6839_v35  ;;  %v6851_v39 = vsub.s32 1, %v6839_v35  ;;  %v6854_v40 = vsub.s32 3, %v6839_v35 }
  0x79   :  { %v5958_v34 = vld [vmem:[#allocation6 + $0x47c] ss:$56 sps:$4 sm:$0xff]  }
  0x7a   :  { %1880 = vmatpush1.bf16.msra.mxu0 %v5821_v49  ;;  %v130_v41 = vrot.slane %v125_v36, %v6845_v37  ;;  %v138_v42 = vrot.slane %v125_v36, %v6848_v38  ;;  %v134_v43 = vrot.slane %v125_v36, %v6851_v39  ;;  %v142_v44 = vrot.slane %v125_v36, %v6854_v40  ;;  %v5953_v36 = vld [vmem:[#allocation6 + $0x470] ss:$56 sps:$4 sm:$0xff]  }
  0x7b   :  { %1921 = vmatpush1.bf16.msra.mxu1 %v5824_v50  ;;  %1881 = vmatprep.subr.bf16.mxu0 %v5829_v51 }
  0x7c   :  { %1922 = vmatprep.subr.bf16.mxu1 %v5832_v52 }
  0x7e   :  { %1882 = vmatpush1.bf16.msra.mxu0 %v5827_v53 }
  0x7f   :  { %1923 = vmatpush1.bf16.msra.mxu1 %v5830_v54  ;;  %1883 = vmatprep.subr.bf16.mxu0 %v5835_v55  ;;  %v5893_v55 = vld [vmem:[#allocation6 + $0x10] ss:$56 sps:$4 sm:$0xff]  }
  0x80   :  { %1924 = vmatprep.subr.bf16.mxu1 %v5838_v56  ;;  %v5896_v56 = vld [vmem:[#allocation6 + $0x18] ss:$56 sps:$4 sm:$0xff]  }
  0x82   :  { %1884 = vmatpush1.bf16.msra.mxu0 %v5833_v57  ;;  %v5901_v57 = vld [vmem:[#allocation6 + $0x84] ss:$56 sps:$4 sm:$0xff]  }
  0x83   :  { %1925 = vmatpush1.bf16.msra.mxu1 %v5836_v58  ;;  %1885 = vmatprep.subr.bf16.mxu0 %v5841_v59  ;;  %v5904_v58 = vld [vmem:[#allocation6 + $0x8c] ss:$56 sps:$4 sm:$0xff]  }
  0x84   :  { %1926 = vmatprep.subr.bf16.mxu1 %v5844_v60  ;;  %v6402_v59 = vld [vmem:[#allocation4 + $0x1f4] ss:$56 sps:$4 sm:$0xff]  }
  0x86   :  { %1886 = vmatpush1.bf16.msra.mxu0 %v5839_v61  ;;  %v6709_v61 = vmov 1.0|1.0  }
  0x87   :  { %1927 = vmatpush1.bf16.msra.mxu1 %v5842_v62  ;;  %1887 = vmatprep.subr.bf16.mxu0 %v5847_v63  ;;  %v5899_v62 = vld [vmem:[#allocation6 + $0x80] ss:$56 sps:$4 sm:$0xff]  }
  0x88   :  { %1928 = vmatprep.subr.bf16.mxu1 %v5850_v1  ;;  %v5902_v63 = vld [vmem:[#allocation6 + $0x88] ss:$56 sps:$4 sm:$0xff]   ;;  %v5907_v1 = vld [vmem:[#allocation6 + $0xf4] ss:$56 sps:$4 sm:$0xff]  }
  0x8a   :  { %1888 = vmatpush1.bf16.msra.mxu0 %v5845_v2  ;;  %v5910_v2 = vld [vmem:[#allocation6 + $0xfc] ss:$56 sps:$4 sm:$0xff]  }
  0x8b   :  { %1929 = vmatpush1.bf16.msra.mxu1 %v5848_v3  ;;  %1889 = vmatprep.subr.bf16.mxu0 %v5853_v4  ;;  %v5905_v3 = vld [vmem:[#allocation6 + $0xf0] ss:$56 sps:$4 sm:$0xff]  }
  0x8c   :  { %1930 = vmatprep.subr.bf16.mxu1 %v5856_v5  ;;  %v5908_v4 = vld [vmem:[#allocation6 + $0xf8] ss:$56 sps:$4 sm:$0xff]   ;;  %v5913_v5 = vld [vmem:[#allocation6 + $0x164] ss:$56 sps:$4 sm:$0xff]  }
  0x8e   :  { %1890 = vmatpush1.bf16.msra.mxu0 %v5851_v6  ;;  %v5916_v6 = vld [vmem:[#allocation6 + $0x16c] ss:$56 sps:$4 sm:$0xff]  }
  0x8f   :  { %1931 = vmatpush1.bf16.msra.mxu1 %v5854_v7  ;;  %1891 = vmatprep.subr.bf16.mxu0 %v5859_v8  ;;  %v5911_v7 = vld [vmem:[#allocation6 + $0x160] ss:$56 sps:$4 sm:$0xff]  }
  0x90   :  { %1932 = vmatprep.subr.bf16.mxu1 %v5862_v9  ;;  %v5914_v8 = vld [vmem:[#allocation6 + $0x168] ss:$56 sps:$4 sm:$0xff]   ;;  %v5919_v9 = vld [vmem:[#allocation6 + $0x1d4] ss:$56 sps:$4 sm:$0xff]  }
  0x92   :  { %1892 = vmatpush1.bf16.msra.mxu0 %v5857_v10  ;;  %v5922_v10 = vld [vmem:[#allocation6 + $0x1dc] ss:$56 sps:$4 sm:$0xff]  }
  0x93   :  { %1933 = vmatpush1.bf16.msra.mxu1 %v5860_v11  ;;  %1893 = vmatprep.subr.bf16.mxu0 %v5865_v12  ;;  %v5917_v11 = vld [vmem:[#allocation6 + $0x1d0] ss:$56 sps:$4 sm:$0xff]  }
  0x94   :  { %1934 = vmatprep.subr.bf16.mxu1 %v5868_v13  ;;  %v5920_v12 = vld [vmem:[#allocation6 + $0x1d8] ss:$56 sps:$4 sm:$0xff]   ;;  %v5925_v13 = vld [vmem:[#allocation6 + $0x244] ss:$56 sps:$4 sm:$0xff]  }
  0x96   :  { %1894 = vmatpush1.bf16.msra.mxu0 %v5863_v14  ;;  %v5928_v14 = vld [vmem:[#allocation6 + $0x24c] ss:$56 sps:$4 sm:$0xff]  }
  0x97   :  { %1935 = vmatpush1.bf16.msra.mxu1 %v5866_v15  ;;  %1895 = vmatprep.subr.bf16.mxu0 %v5871_v16  ;;  %v5923_v15 = vld [vmem:[#allocation6 + $0x240] ss:$56 sps:$4 sm:$0xff]  }
  0x98   :  { %1936 = vmatprep.subr.bf16.mxu1 %v5874_v17  ;;  %v5926_v16 = vld [vmem:[#allocation6 + $0x248] ss:$56 sps:$4 sm:$0xff]   ;;  %v5931_v17 = vld [vmem:[#allocation6 + $0x2b4] ss:$56 sps:$4 sm:$0xff]  }
  0x9a   :  { %1896 = vmatpush1.bf16.msra.mxu0 %v5869_v18  ;;  %v5934_v18 = vld [vmem:[#allocation6 + $0x2bc] ss:$56 sps:$4 sm:$0xff]  }
  0x9b   :  { %1937 = vmatpush1.bf16.msra.mxu1 %v5872_v19  ;;  %1897 = vmatprep.subr.bf16.mxu0 %v5877_v20  ;;  %v5929_v19 = vld [vmem:[#allocation6 + $0x2b0] ss:$56 sps:$4 sm:$0xff]  }
  0x9c   :  { %1938 = vmatprep.subr.bf16.mxu1 %v5880_v21  ;;  %v5932_v20 = vld [vmem:[#allocation6 + $0x2b8] ss:$56 sps:$4 sm:$0xff]   ;;  %v5937_v21 = vld [vmem:[#allocation6 + $0x324] ss:$56 sps:$4 sm:$0xff]  }
  0x9e   :  { %1898 = vmatpush1.bf16.msra.mxu0 %v5875_v22  ;;  %v5940_v22 = vld [vmem:[#allocation6 + $0x32c] ss:$56 sps:$4 sm:$0xff]  }
  0x9f   :  { %1939 = vmatpush1.bf16.msra.mxu1 %v5878_v23  ;;  %1899 = vmatprep.subr.bf16.mxu0 %v5883_v24  ;;  %v5935_v23 = vld [vmem:[#allocation6 + $0x320] ss:$56 sps:$4 sm:$0xff]  }
  0xa0   :  { %1940 = vmatprep.subr.bf16.mxu1 %v5886_v25  ;;  %v5938_v24 = vld [vmem:[#allocation6 + $0x328] ss:$56 sps:$4 sm:$0xff]   ;;  %v5943_v25 = vld [vmem:[#allocation6 + $0x394] ss:$56 sps:$4 sm:$0xff]  }
  0xa2   :  { %1900 = vmatpush1.bf16.msra.mxu0 %v5881_v26  ;;  %v5946_v26 = vld [vmem:[#allocation6 + $0x39c] ss:$56 sps:$4 sm:$0xff]  }
  0xa3   :  { %1941 = vmatpush1.bf16.msra.mxu1 %v5884_v27  ;;  %1901 = vmatprep.subr.bf16.mxu0 %v5889_v28  ;;  %v5941_v27 = vld [vmem:[#allocation6 + $0x390] ss:$56 sps:$4 sm:$0xff]  }
  0xa4   :  { %1942 = vmatprep.subr.bf16.mxu1 %v5892_v29  ;;  %v5944_v28 = vld [vmem:[#allocation6 + $0x398] ss:$56 sps:$4 sm:$0xff]   ;;  %v5949_v29 = vld [vmem:[#allocation6 + $0x404] ss:$56 sps:$4 sm:$0xff]  }
  0xa6   :  { %1902 = vmatpush1.bf16.msra.mxu0 %v5887_v30  ;;  %v5952_v30 = vld [vmem:[#allocation6 + $0x40c] ss:$56 sps:$4 sm:$0xff]  }
  0xa7   :  { %1943 = vmatpush1.bf16.msra.mxu1 %v5890_v31  ;;  %1953 = vmatprep.subr.bf16.mxu0 %v5895_v32  ;;  %v5947_v31 = vld [vmem:[#allocation6 + $0x400] ss:$56 sps:$4 sm:$0xff]  }
  0xa8   :  { %1994 = vmatprep.subr.bf16.mxu1 %v5898_v33  ;;  %v5950_v32 = vld [vmem:[#allocation6 + $0x408] ss:$56 sps:$4 sm:$0xff]   ;;  %v5955_v33 = vld [vmem:[#allocation6 + $0x474] ss:$56 sps:$4 sm:$0xff]  }
 0x13b   :  { %v217_v45 = vpop.f32.mrb[0].mxu0 }
 0x13c   :  { %v218_v46 = vadd.f32 %v217_v45, %v130_v41  ;;  %v288_v47 = vpop.f32.mrb[0].mxu1  ;;  %v219_v48 = vpop.f32.mrb[1].mxu0  ;;  %v5956_v41 = vld [vmem:[#allocation6 + $0x478] ss:$56 sps:$4 sm:$0xff]   ;;  %v5962_v45 = vld [vmem:[#allocation6 + $0x4e8] ss:$56 sps:$4 sm:$0xff]  }
 0x13d   :  { %v289_v49 = vadd.f32 %v288_v47, %v138_v42  ;;  %v220_v50 = vadd.f32 %v219_v48, %v134_v43  ;;  %v290_v51 = vpop.f32.mrb[1].mxu1  ;;  %v5961_v42 = vld [vmem:[#allocation6 + $0x4e4] ss:$56 sps:$4 sm:$0xff]   ;;  %v5965_v48 = vld [vmem:[#allocation6 + $0x550] ss:$56 sps:$4 sm:$0xff]  }
 0x13e   :  { %v291_v52 = vadd.f32 %v290_v51, %v142_v44  ;;  %v5964_v43 = vld [vmem:[#allocation6 + $0x4ec] ss:$56 sps:$4 sm:$0xff]   ;;  %v5959_v44 = vld [vmem:[#allocation6 + $0x4e0] ss:$56 sps:$4 sm:$0xff]   ;;  %v5970_v47 = vld [vmem:[#allocation6 + $0x55c] ss:$56 sps:$4 sm:$0xff]  }
 0x13f   :  { %v293_v53 = vmax.f32 %v218_v46, %v289_v49  ;;  %v5967_v46 = vld [vmem:[#allocation6 + $0x554] ss:$56 sps:$4 sm:$0xff]   ;;  %v5968_v49 = vld [vmem:[#allocation6 + $0x558] ss:$56 sps:$4 sm:$0xff]  }
 0x140   :  { %v294_v54 = vmax.f32 %v220_v50, %v291_v52  ;;  %v5973_v50 = vld [vmem:[#allocation6 + $0x5c4] ss:$56 sps:$4 sm:$0xff]   ;;  %v5971_v52 = vld [vmem:[#allocation6 + $0x5c0] ss:$56 sps:$4 sm:$0xff]  }
 0x141   :  { %vm295_vm2 = vcmp.gt.f32.partialorder %v293_v53, 1.0  ;;  %v5976_v51 = vld [vmem:[#allocation6 + $0x5cc] ss:$56 sps:$4 sm:$0xff]   ;;  %v5974_v53 = vld [vmem:[#allocation6 + $0x5c8] ss:$56 sps:$4 sm:$0xff]  }
 0x142   :  { %vm296_vm3 = vcmp.gt.f32.partialorder %v294_v54, 1.0  ;;  %vm6864_vm5 = vmpackc.low %vm295_vm2, %vm295_vm2  ;;  %v5979_v54 = vld [vmem:[#allocation6 + $0x634] ss:$56 sps:$4 sm:$0xff]   ;;  %vm6710_vm2 = vmmov 0  }
 0x143   :  { %vm6860_vm4 = vmpackc.low %vm296_vm3, %vm296_vm3 }
 0x144   :  { %5150 = vmatprep.mubr.msk.bf16.mxu0 %vm6860_vm4, %v6709_v61  ;;  %5154 = vmatprep.mubr.msk.bf16.mxu1 %vm6860_vm4, %v6709_v61 }
 0x145   :  { %5152 = vmatmul.mubr.msk.bf16.vlgmr.msra.gmra.mrb[4].mxu0 %vm6864_vm5, %v6709_v61  ;;  %5156 = vmatmul.mubr.msk.bf16.vlgmr.msra.gmra.mrb[4].mxu1 %vm6864_vm5, %v6709_v61 }
 0x146   :  { %1954 = vmatpush1.bf16.msra.mxu0 %v5893_v55  ;;  %1995 = vmatpush1.bf16.msra.mxu1 %v5896_v56  ;;  %v5982_v55 = vld [vmem:[#allocation6 + $0x63c] ss:$56 sps:$4 sm:$0xff]   ;;  %v5977_v56 = vld [vmem:[#allocation6 + $0x630] ss:$56 sps:$4 sm:$0xff]  }
 0x147   :  { %5158 = vmatprep.mubr.msk.bf16.mxu0 %vm6860_vm4, %v6709_v61  ;;  %5162 = vmatprep.mubr.msk.bf16.mxu1 %vm6860_vm4, %v6709_v61 }
 0x148   :  { %1955 = vmatprep.subr.bf16.mxu0 %v5901_v57  ;;  %1996 = vmatprep.subr.bf16.mxu1 %v5904_v58  ;;  %v5980_v57 = vld [vmem:[#allocation6 + $0x638] ss:$56 sps:$4 sm:$0xff]   ;;  %v5985_v58 = vld [vmem:[#allocation6 + $0x6a4] ss:$56 sps:$4 sm:$0xff]  }
 0x14a   :  { %1956 = vmatpush1.bf16.msra.mxu0 %v5899_v62  ;;  %1997 = vmatpush1.bf16.msra.mxu1 %v5902_v63  ;;  %v5988_v62 = vld [vmem:[#allocation6 + $0x6ac] ss:$56 sps:$4 sm:$0xff]   ;;  %v5983_v63 = vld [vmem:[#allocation6 + $0x6a0] ss:$56 sps:$4 sm:$0xff]  }
 0x14b   :  { %1957 = vmatprep.subr.bf16.mxu0 %v5907_v1  ;;  %1998 = vmatprep.subr.bf16.mxu1 %v5910_v2  ;;  %v5986_v1 = vld [vmem:[#allocation6 + $0x6a8] ss:$56 sps:$4 sm:$0xff]   ;;  %v5991_v2 = vld [vmem:[#allocation6 + $0x24] ss:$56 sps:$4 sm:$0xff]  }
 0x14e   :  { %1958 = vmatpush1.bf16.msra.mxu0 %v5905_v3  ;;  %1999 = vmatpush1.bf16.msra.mxu1 %v5908_v4  ;;  %v5994_v3 = vld [vmem:[#allocation6 + $0x2c] ss:$56 sps:$4 sm:$0xff]   ;;  %v5989_v4 = vld [vmem:[#allocation6 + $0x20] ss:$56 sps:$4 sm:$0xff]  }
 0x14f   :  { %1959 = vmatprep.subr.bf16.mxu0 %v5913_v5  ;;  %2000 = vmatprep.subr.bf16.mxu1 %v5916_v6  ;;  %v5992_v5 = vld [vmem:[#allocation6 + $0x28] ss:$56 sps:$4 sm:$0xff]   ;;  %v5997_v6 = vld [vmem:[#allocation6 + $0x94] ss:$56 sps:$4 sm:$0xff]  }
 0x152   :  { %1960 = vmatpush1.bf16.msra.mxu0 %v5911_v7  ;;  %2001 = vmatpush1.bf16.msra.mxu1 %v5914_v8  ;;  %v6000_v7 = vld [vmem:[#allocation6 + $0x9c] ss:$56 sps:$4 sm:$0xff]   ;;  %v5995_v8 = vld [vmem:[#allocation6 + $0x90] ss:$56 sps:$4 sm:$0xff]  }
 0x153   :  { %1961 = vmatprep.subr.bf16.mxu0 %v5919_v9  ;;  %2002 = vmatprep.subr.bf16.mxu1 %v5922_v10  ;;  %v5998_v9 = vld [vmem:[#allocation6 + $0x98] ss:$56 sps:$4 sm:$0xff]   ;;  %v6003_v10 = vld [vmem:[#allocation6 + $0x104] ss:$56 sps:$4 sm:$0xff]  }
 0x156   :  { %1962 = vmatpush1.bf16.msra.mxu0 %v5917_v11  ;;  %2003 = vmatpush1.bf16.msra.mxu1 %v5920_v12  ;;  %v6006_v11 = vld [vmem:[#allocation6 + $0x10c] ss:$56 sps:$4 sm:$0xff]   ;;  %v6001_v12 = vld [vmem:[#allocation6 + $0x100] ss:$56 sps:$4 sm:$0xff]  }
 0x157   :  { %1963 = vmatprep.subr.bf16.mxu0 %v5925_v13  ;;  %2004 = vmatprep.subr.bf16.mxu1 %v5928_v14  ;;  %v6004_v13 = vld [vmem:[#allocation6 + $0x108] ss:$56 sps:$4 sm:$0xff]   ;;  %v6009_v14 = vld [vmem:[#allocation6 + $0x174] ss:$56 sps:$4 sm:$0xff]  }
 0x15a   :  { %1964 = vmatpush1.bf16.msra.mxu0 %v5923_v15  ;;  %2005 = vmatpush1.bf16.msra.mxu1 %v5926_v16  ;;  %v6007_v15 = vld [vmem:[#allocation6 + $0x170] ss:$56 sps:$4 sm:$0xff]   ;;  %v6012_v16 = vld [vmem:[#allocation6 + $0x17c] ss:$56 sps:$4 sm:$0xff]  }
 0x15b   :  { %1965 = vmatprep.subr.bf16.mxu0 %v5931_v17  ;;  %2006 = vmatprep.subr.bf16.mxu1 %v5934_v18  ;;  %v6010_v17 = vld [vmem:[#allocation6 + $0x178] ss:$56 sps:$4 sm:$0xff]   ;;  %v6015_v18 = vld [vmem:[#allocation6 + $0x1e4] ss:$56 sps:$4 sm:$0xff]  }
 0x15e   :  { %1966 = vmatpush1.bf16.msra.mxu0 %v5929_v19  ;;  %2007 = vmatpush1.bf16.msra.mxu1 %v5932_v20  ;;  %v6013_v19 = vld [vmem:[#allocation6 + $0x1e0] ss:$56 sps:$4 sm:$0xff]   ;;  %v6018_v20 = vld [vmem:[#allocation6 + $0x1ec] ss:$56 sps:$4 sm:$0xff]  }
 0x15f   :  { %1967 = vmatprep.subr.bf16.mxu0 %v5937_v21  ;;  %2008 = vmatprep.subr.bf16.mxu1 %v5940_v22  ;;  %v6016_v21 = vld [vmem:[#allocation6 + $0x1e8] ss:$56 sps:$4 sm:$0xff]   ;;  %v6021_v22 = vld [vmem:[#allocation6 + $0x254] ss:$56 sps:$4 sm:$0xff]  }
 0x162   :  { %1968 = vmatpush1.bf16.msra.mxu0 %v5935_v23  ;;  %2009 = vmatpush1.bf16.msra.mxu1 %v5938_v24  ;;  %v6019_v23 = vld [vmem:[#allocation6 + $0x250] ss:$56 sps:$4 sm:$0xff]   ;;  %v6024_v24 = vld [vmem:[#allocation6 + $0x25c] ss:$56 sps:$4 sm:$0xff]  }
 0x163   :  { %1969 = vmatprep.subr.bf16.mxu0 %v5943_v25  ;;  %2010 = vmatprep.subr.bf16.mxu1 %v5946_v26  ;;  %v6022_v25 = vld [vmem:[#allocation6 + $0x258] ss:$56 sps:$4 sm:$0xff]   ;;  %v6027_v26 = vld [vmem:[#allocation6 + $0x2c4] ss:$56 sps:$4 sm:$0xff]  }
 0x166   :  { %1970 = vmatpush1.bf16.msra.mxu0 %v5941_v27  ;;  %2011 = vmatpush1.bf16.msra.mxu1 %v5944_v28  ;;  %v6030_v27 = vld [vmem:[#allocation6 + $0x2cc] ss:$56 sps:$4 sm:$0xff]   ;;  %v6025_v28 = vld [vmem:[#allocation6 + $0x2c0] ss:$56 sps:$4 sm:$0xff]  }
 0x167   :  { %1971 = vmatprep.subr.bf16.mxu0 %v5949_v29  ;;  %2012 = vmatprep.subr.bf16.mxu1 %v5952_v30  ;;  %v6028_v29 = vld [vmem:[#allocation6 + $0x2c8] ss:$56 sps:$4 sm:$0xff]   ;;  %v6033_v30 = vld [vmem:[#allocation6 + $0x334] ss:$56 sps:$4 sm:$0xff]  }
 0x16a   :  { %1972 = vmatpush1.bf16.msra.mxu0 %v5947_v31  ;;  %2013 = vmatpush1.bf16.msra.mxu1 %v5950_v32  ;;  %v6031_v31 = vld [vmem:[#allocation6 + $0x330] ss:$56 sps:$4 sm:$0xff]   ;;  %v6036_v32 = vld [vmem:[#allocation6 + $0x33c] ss:$56 sps:$4 sm:$0xff]  }
 0x16b   :  { %1973 = vmatprep.subr.bf16.mxu0 %v5955_v33  ;;  %2014 = vmatprep.subr.bf16.mxu1 %v5958_v34  ;;  %v6034_v33 = vld [vmem:[#allocation6 + $0x338] ss:$56 sps:$4 sm:$0xff]   ;;  %v6039_v34 = vld [vmem:[#allocation6 + $0x3a4] ss:$56 sps:$4 sm:$0xff]  }
 0x16e   :  { %1974 = vmatpush1.bf16.msra.mxu0 %v5953_v36  ;;  %2015 = vmatpush1.bf16.msra.mxu1 %v5956_v41  ;;  %v6037_v36 = vld [vmem:[#allocation6 + $0x3a0] ss:$56 sps:$4 sm:$0xff]   ;;  %v6042_v41 = vld [vmem:[#allocation6 + $0x3ac] ss:$56 sps:$4 sm:$0xff]  }
 0x16f   :  { %1975 = vmatprep.subr.bf16.mxu0 %v5961_v42  ;;  %2016 = vmatprep.subr.bf16.mxu1 %v5964_v43  ;;  %v6040_v42 = vld [vmem:[#allocation6 + $0x3a8] ss:$56 sps:$4 sm:$0xff]   ;;  %v6045_v43 = vld [vmem:[#allocation6 + $0x414] ss:$56 sps:$4 sm:$0xff]  }
 0x172   :  { %1976 = vmatpush1.bf16.msra.mxu0 %v5959_v44  ;;  %2017 = vmatpush1.bf16.msra.mxu1 %v5962_v45  ;;  %v6048_v44 = vld [vmem:[#allocation6 + $0x41c] ss:$56 sps:$4 sm:$0xff]   ;;  %v6043_v45 = vld [vmem:[#allocation6 + $0x410] ss:$56 sps:$4 sm:$0xff]  }
 0x173   :  { %1977 = vmatprep.subr.bf16.mxu0 %v5967_v46  ;;  %2018 = vmatprep.subr.bf16.mxu1 %v5970_v47  ;;  %v6046_v46 = vld [vmem:[#allocation6 + $0x418] ss:$56 sps:$4 sm:$0xff]   ;;  %v6051_v47 = vld [vmem:[#allocation6 + $0x484] ss:$56 sps:$4 sm:$0xff]  }
 0x176   :  { %1978 = vmatpush1.bf16.msra.mxu0 %v5965_v48  ;;  %2019 = vmatpush1.bf16.msra.mxu1 %v5968_v49  ;;  %v6054_v48 = vld [vmem:[#allocation6 + $0x48c] ss:$56 sps:$4 sm:$0xff]   ;;  %v6049_v49 = vld [vmem:[#allocation6 + $0x480] ss:$56 sps:$4 sm:$0xff]  }
 0x177   :  { %1979 = vmatprep.subr.bf16.mxu0 %v5973_v50  ;;  %2020 = vmatprep.subr.bf16.mxu1 %v5976_v51  ;;  %v6052_v50 = vld [vmem:[#allocation6 + $0x488] ss:$56 sps:$4 sm:$0xff]   ;;  %v6057_v51 = vld [vmem:[#allocation6 + $0x4f4] ss:$56 sps:$4 sm:$0xff]  }
 0x17a   :  { %1980 = vmatpush1.bf16.msra.mxu0 %v5971_v52  ;;  %2021 = vmatpush1.bf16.msra.mxu1 %v5974_v53  ;;  %v6060_v52 = vld [vmem:[#allocation6 + $0x4fc] ss:$56 sps:$4 sm:$0xff]   ;;  %v6055_v53 = vld [vmem:[#allocation6 + $0x4f0] ss:$56 sps:$4 sm:$0xff]  }
 0x17b   :  { %1981 = vmatprep.subr.bf16.mxu0 %v5979_v54  ;;  %2022 = vmatprep.subr.bf16.mxu1 %v5982_v55  ;;  %v6058_v54 = vld [vmem:[#allocation6 + $0x4f8] ss:$56 sps:$4 sm:$0xff]   ;;  %v6063_v55 = vld [vmem:[#allocation6 + $0x564] ss:$56 sps:$4 sm:$0xff]  }
 0x17e   :  { %1982 = vmatpush1.bf16.msra.mxu0 %v5977_v56  ;;  %2023 = vmatpush1.bf16.msra.mxu1 %v5980_v57  ;;  %v6066_v56 = vld [vmem:[#allocation6 + $0x56c] ss:$56 sps:$4 sm:$0xff]   ;;  %v6061_v57 = vld [vmem:[#allocation6 + $0x560] ss:$56 sps:$4 sm:$0xff]  }
 0x17f   :  { %1983 = vmatprep.subr.bf16.mxu0 %v5985_v58  ;;  %2024 = vmatprep.subr.bf16.mxu1 %v5988_v62  ;;  %v6064_v58 = vld [vmem:[#allocation6 + $0x568] ss:$56 sps:$4 sm:$0xff]   ;;  %v6069_v62 = vld [vmem:[#allocation6 + $0x5d4] ss:$56 sps:$4 sm:$0xff]  }
 0x182   :  { %1984 = vmatpush1.bf16.msra.mxu0 %v5983_v63  ;;  %2025 = vmatpush1.bf16.msra.mxu1 %v5986_v1  ;;  %v6072_v63 = vld [vmem:[#allocation6 + $0x5dc] ss:$56 sps:$4 sm:$0xff]   ;;  %v6067_v1 = vld [vmem:[#allocation6 + $0x5d0] ss:$56 sps:$4 sm:$0xff]  }
 0x183   :  { %2035 = vmatprep.subr.bf16.mxu0 %v5991_v2  ;;  %2076 = vmatprep.subr.bf16.mxu1 %v5994_v3  ;;  %v6070_v2 = vld [vmem:[#allocation6 + $0x5d8] ss:$56 sps:$4 sm:$0xff]   ;;  %v6075_v3 = vld [vmem:[#allocation6 + $0x644] ss:$56 sps:$4 sm:$0xff]  }
 0x185   :  { %5160 = vmatmul.mubr.msk.bf16.vlgmr.msra.gmra.mrb[8].mxu0 %vm6864_vm5, %v6709_v61  ;;  %5164 = vmatmul.mubr.msk.bf16.vlgmr.msra.gmra.mrb[8].mxu1 %vm6864_vm5, %v6709_v61 }
 0x186   :  { %2036 = vmatpush1.bf16.msra.mxu0 %v5989_v4  ;;  %5166 = vmatprep.mubr.msk.bf16.mxu0 %vm6860_vm4, %v6709_v61  ;;  %v6078_v4 = vld [vmem:[#allocation6 + $0x64c] ss:$56 sps:$4 sm:$0xff]  }
 0x187   :  { %2077 = vmatpush1.bf16.msra.mxu1 %v5992_v5  ;;  %5170 = vmatprep.mubr.msk.bf16.mxu1 %vm6860_vm4, %v6709_v61  ;;  %v6073_v5 = vld [vmem:[#allocation6 + $0x640] ss:$56 sps:$4 sm:$0xff]  }
 0x188   :  { %2037 = vmatprep.subr.bf16.mxu0 %v5997_v6  ;;  %2078 = vmatprep.subr.bf16.mxu1 %v6000_v7  ;;  %v6076_v6 = vld [vmem:[#allocation6 + $0x648] ss:$56 sps:$4 sm:$0xff]   ;;  %v6081_v7 = vld [vmem:[#allocation6 + $0x6b4] ss:$56 sps:$4 sm:$0xff]  }
 0x18a   :  { %2038 = vmatpush1.bf16.msra.mxu0 %v5995_v8  ;;  %v6084_v8 = vld [vmem:[#allocation6 + $0x6bc] ss:$56 sps:$4 sm:$0xff]  }
 0x18b   :  { %2079 = vmatpush1.bf16.msra.mxu1 %v5998_v9  ;;  %2039 = vmatprep.subr.bf16.mxu0 %v6003_v10  ;;  %v6079_v9 = vld [vmem:[#allocation6 + $0x6b0] ss:$56 sps:$4 sm:$0xff]  }
 0x18c   :  { %2080 = vmatprep.subr.bf16.mxu1 %v6006_v11  ;;  %v6082_v10 = vld [vmem:[#allocation6 + $0x6b8] ss:$56 sps:$4 sm:$0xff]   ;;  %v6087_v11 = vld [vmem:[#allocation6 + $0x34] ss:$56 sps:$4 sm:$0xff]  }
 0x18e   :  { %2040 = vmatpush1.bf16.msra.mxu0 %v6001_v12  ;;  %v6090_v12 = vld [vmem:[#allocation4 + $0x4] ss:$56 sps:$4 sm:$0xff]  }
 0x18f   :  { %2081 = vmatpush1.bf16.msra.mxu1 %v6004_v13  ;;  %2041 = vmatprep.subr.bf16.mxu0 %v6009_v14  ;;  %v6085_v13 = vld [vmem:[#allocation6 + $0x30] ss:$56 sps:$4 sm:$0xff]   ;;  %v6088_v14 = vld [vmem:[#allocation4] ss:$56 sps:$4 sm:$0xff]  }
 0x190   :  { %2082 = vmatprep.subr.bf16.mxu1 %v6012_v16  ;;  %v6096_v16 = vld [vmem:[#allocation4 + $0x74] ss:$56 sps:$4 sm:$0xff]  }
 0x192   :  { %2042 = vmatpush1.bf16.msra.mxu0 %v6007_v15  ;;  %v6093_v15 = vld [vmem:[#allocation6 + $0xa4] ss:$56 sps:$4 sm:$0xff]  }
 0x193   :  { %2083 = vmatpush1.bf16.msra.mxu1 %v6010_v17  ;;  %2043 = vmatprep.subr.bf16.mxu0 %v6015_v18  ;;  %v6091_v17 = vld [vmem:[#allocation6 + $0xa0] ss:$56 sps:$4 sm:$0xff]   ;;  %v6094_v18 = vld [vmem:[#allocation4 + $0x70] ss:$56 sps:$4 sm:$0xff]  }
 0x194   :  { %2084 = vmatprep.subr.bf16.mxu1 %v6018_v20  ;;  %v6102_v20 = vld [vmem:[#allocation4 + $0xe4] ss:$56 sps:$4 sm:$0xff]  }
 0x196   :  { %2044 = vmatpush1.bf16.msra.mxu0 %v6013_v19  ;;  %v6099_v19 = vld [vmem:[#allocation6 + $0x114] ss:$56 sps:$4 sm:$0xff]  }
 0x197   :  { %2085 = vmatpush1.bf16.msra.mxu1 %v6016_v21  ;;  %2045 = vmatprep.subr.bf16.mxu0 %v6021_v22  ;;  %v6097_v21 = vld [vmem:[#allocation6 + $0x110] ss:$56 sps:$4 sm:$0xff]   ;;  %v6100_v22 = vld [vmem:[#allocation4 + $0xe0] ss:$56 sps:$4 sm:$0xff]  }
 0x198   :  { %2086 = vmatprep.subr.bf16.mxu1 %v6024_v24  ;;  %v6108_v24 = vld [vmem:[#allocation4 + $0x154] ss:$56 sps:$4 sm:$0xff]  }
 0x19a   :  { %2046 = vmatpush1.bf16.msra.mxu0 %v6019_v23  ;;  %v6105_v23 = vld [vmem:[#allocation6 + $0x184] ss:$56 sps:$4 sm:$0xff]  }
 0x19b   :  { %2087 = vmatpush1.bf16.msra.mxu1 %v6022_v25  ;;  %2047 = vmatprep.subr.bf16.mxu0 %v6027_v26  ;;  %v6103_v25 = vld [vmem:[#allocation6 + $0x180] ss:$56 sps:$4 sm:$0xff]   ;;  %v6106_v26 = vld [vmem:[#allocation4 + $0x150] ss:$56 sps:$4 sm:$0xff]  }
 0x19c   :  { %2088 = vmatprep.subr.bf16.mxu1 %v6030_v27  ;;  %v6111_v27 = vld [vmem:[#allocation6 + $0x1f4] ss:$56 sps:$4 sm:$0xff]  }
 0x19e   :  { %2048 = vmatpush1.bf16.msra.mxu0 %v6025_v28  ;;  %v6114_v28 = vld [vmem:[#allocation4 + $0x1c4] ss:$56 sps:$4 sm:$0xff]  }
 0x19f   :  { %2089 = vmatpush1.bf16.msra.mxu1 %v6028_v29  ;;  %2049 = vmatprep.subr.bf16.mxu0 %v6033_v30  ;;  %v6109_v29 = vld [vmem:[#allocation6 + $0x1f0] ss:$56 sps:$4 sm:$0xff]   ;;  %v6112_v30 = vld [vmem:[#allocation4 + $0x1c0] ss:$56 sps:$4 sm:$0xff]  }
 0x1a0   :  { %2090 = vmatprep.subr.bf16.mxu1 %v6036_v32  ;;  %v6120_v32 = vld [vmem:[#allocation4 + $0x234] ss:$56 sps:$4 sm:$0xff]  }
 0x1a2   :  { %2050 = vmatpush1.bf16.msra.mxu0 %v6031_v31  ;;  %v6117_v31 = vld [vmem:[#allocation6 + $0x264] ss:$56 sps:$4 sm:$0xff]  }
 0x1a3   :  { %2091 = vmatpush1.bf16.msra.mxu1 %v6034_v33  ;;  %2051 = vmatprep.subr.bf16.mxu0 %v6039_v34  ;;  %v6115_v33 = vld [vmem:[#allocation6 + $0x260] ss:$56 sps:$4 sm:$0xff]   ;;  %v6118_v34 = vld [vmem:[#allocation4 + $0x230] ss:$56 sps:$4 sm:$0xff]  }
 0x1a4   :  { %2092 = vmatprep.subr.bf16.mxu1 %v6042_v41  ;;  %v6126_v41 = vld [vmem:[#allocation4 + $0x2a4] ss:$56 sps:$4 sm:$0xff]  }
 0x1a6   :  { %2052 = vmatpush1.bf16.msra.mxu0 %v6037_v36  ;;  %v6123_v36 = vld [vmem:[#allocation6 + $0x2d4] ss:$56 sps:$4 sm:$0xff]  }
 0x1a7   :  { %2093 = vmatpush1.bf16.msra.mxu1 %v6040_v42  ;;  %2053 = vmatprep.subr.bf16.mxu0 %v6045_v43  ;;  %v6121_v42 = vld [vmem:[#allocation6 + $0x2d0] ss:$56 sps:$4 sm:$0xff]   ;;  %v6124_v43 = vld [vmem:[#allocation4 + $0x2a0] ss:$56 sps:$4 sm:$0xff]  }
 0x1a8   :  { %2094 = vmatprep.subr.bf16.mxu1 %v6048_v44  ;;  %v6129_v44 = vld [vmem:[#allocation6 + $0x344] ss:$56 sps:$4 sm:$0xff]  }
 0x1aa   :  { %2054 = vmatpush1.bf16.msra.mxu0 %v6043_v45  ;;  %v6132_v45 = vld [vmem:[#allocation4 + $0x314] ss:$56 sps:$4 sm:$0xff]  }
 0x1ab   :  { %2095 = vmatpush1.bf16.msra.mxu1 %v6046_v46  ;;  %2055 = vmatprep.subr.bf16.mxu0 %v6051_v47  ;;  %v6127_v46 = vld [vmem:[#allocation6 + $0x340] ss:$56 sps:$4 sm:$0xff]   ;;  %v6130_v47 = vld [vmem:[#allocation4 + $0x310] ss:$56 sps:$4 sm:$0xff]  }
 0x1ac   :  { %2096 = vmatprep.subr.bf16.mxu1 %v6054_v48  ;;  %v6135_v48 = vld [vmem:[#allocation6 + $0x3b4] ss:$56 sps:$4 sm:$0xff]  }
 0x1ae   :  { %2056 = vmatpush1.bf16.msra.mxu0 %v6049_v49  ;;  %v6138_v49 = vld [vmem:[#allocation4 + $0x384] ss:$56 sps:$4 sm:$0xff]  }
 0x1af   :  { %2097 = vmatpush1.bf16.msra.mxu1 %v6052_v50  ;;  %2057 = vmatprep.subr.bf16.mxu0 %v6057_v51  ;;  %v6133_v50 = vld [vmem:[#allocation6 + $0x3b0] ss:$56 sps:$4 sm:$0xff]   ;;  %v6136_v51 = vld [vmem:[#allocation4 + $0x380] ss:$56 sps:$4 sm:$0xff]  }
 0x1b0   :  { %2098 = vmatprep.subr.bf16.mxu1 %v6060_v52  ;;  %v6141_v52 = vld [vmem:[#allocation6 + $0x424] ss:$56 sps:$4 sm:$0xff]  }
 0x1b2   :  { %2058 = vmatpush1.bf16.msra.mxu0 %v6055_v53  ;;  %v6144_v53 = vld [vmem:[#allocation4 + $0x3f4] ss:$56 sps:$4 sm:$0xff]  }
 0x1b3   :  { %2099 = vmatpush1.bf16.msra.mxu1 %v6058_v54  ;;  %2059 = vmatprep.subr.bf16.mxu0 %v6063_v55  ;;  %v6139_v54 = vld [vmem:[#allocation6 + $0x420] ss:$56 sps:$4 sm:$0xff]   ;;  %v6142_v55 = vld [vmem:[#allocation4 + $0x3f0] ss:$56 sps:$4 sm:$0xff]  }
 0x1b4   :  { %2100 = vmatprep.subr.bf16.mxu1 %v6066_v56  ;;  %v6147_v56 = vld [vmem:[#allocation6 + $0x494] ss:$56 sps:$4 sm:$0xff]  }
 0x1b6   :  { %2060 = vmatpush1.bf16.msra.mxu0 %v6061_v57  ;;  %v6150_v57 = vld [vmem:[#allocation4 + $0x464] ss:$56 sps:$4 sm:$0xff]  }
 0x1b7   :  { %2101 = vmatpush1.bf16.msra.mxu1 %v6064_v58  ;;  %2061 = vmatprep.subr.bf16.mxu0 %v6069_v62  ;;  %v6145_v58 = vld [vmem:[#allocation6 + $0x490] ss:$56 sps:$4 sm:$0xff]   ;;  %v6148_v62 = vld [vmem:[#allocation4 + $0x460] ss:$56 sps:$4 sm:$0xff]  }
 0x1b8   :  { %2102 = vmatprep.subr.bf16.mxu1 %v6072_v63  ;;  %v6153_v63 = vld [vmem:[#allocation6 + $0x504] ss:$56 sps:$4 sm:$0xff]  }
 0x1ba   :  { %2062 = vmatpush1.bf16.msra.mxu0 %v6067_v1  ;;  %v6156_v1 = vld [vmem:[#allocation4 + $0x4d4] ss:$56 sps:$4 sm:$0xff]  }
 0x1bb   :  { %2103 = vmatpush1.bf16.msra.mxu1 %v6070_v2  ;;  %2063 = vmatprep.subr.bf16.mxu0 %v6075_v3  ;;  %v6151_v2 = vld [vmem:[#allocation6 + $0x500] ss:$56 sps:$4 sm:$0xff]   ;;  %v6154_v3 = vld [vmem:[#allocation4 + $0x4d0] ss:$56 sps:$4 sm:$0xff]  }
 0x1bc   :  { %2104 = vmatprep.subr.bf16.mxu1 %v6078_v4  ;;  %v6159_v4 = vld [vmem:[#allocation6 + $0x574] ss:$56 sps:$4 sm:$0xff]  }
 0x1be   :  { %2064 = vmatpush1.bf16.msra.mxu0 %v6073_v5  ;;  %v6162_v5 = vld [vmem:[#allocation4 + $0x544] ss:$56 sps:$4 sm:$0xff]  }
 0x1bf   :  { %2105 = vmatpush1.bf16.msra.mxu1 %v6076_v6  ;;  %2065 = vmatprep.subr.bf16.mxu0 %v6081_v7  ;;  %v6157_v6 = vld [vmem:[#allocation6 + $0x570] ss:$56 sps:$4 sm:$0xff]   ;;  %v6160_v7 = vld [vmem:[#allocation4 + $0x540] ss:$56 sps:$4 sm:$0xff]  }
 0x1c0   :  { %2106 = vmatprep.subr.bf16.mxu1 %v6084_v8  ;;  %v6165_v8 = vld [vmem:[#allocation6 + $0x5e4] ss:$56 sps:$4 sm:$0xff]  }
 0x1c2   :  { %2066 = vmatpush1.bf16.msra.mxu0 %v6079_v9  ;;  %v6168_v9 = vld [vmem:[#allocation4 + $0x5b4] ss:$56 sps:$4 sm:$0xff]  }
 0x1c3   :  { %2107 = vmatpush1.bf16.msra.mxu1 %v6082_v10  ;;  %2117 = vmatprep.subr.bf16.mxu0 %v6087_v11  ;;  %v6163_v10 = vld [vmem:[#allocation6 + $0x5e0] ss:$56 sps:$4 sm:$0xff]   ;;  %v6166_v11 = vld [vmem:[#allocation4 + $0x5b0] ss:$56 sps:$4 sm:$0xff]  }
 0x1c4   :  { %3278 = vmatprep.subr.bf16.mxu1 %v6090_v12  ;;  %v6171_v12 = vld [vmem:[#allocation6 + $0x654] ss:$56 sps:$4 sm:$0xff]  }
 0x1c5   :  { %5168 = vmatmul.mubr.msk.bf16.vlgmr.msra.gmra.mrb[12].mxu0 %vm6864_vm5, %v6709_v61 }
 0x1c6   :  { %5172 = vmatmul.mubr.msk.bf16.vlgmr.msra.gmra.mrb[12].mxu1 %vm6864_vm5, %v6709_v61  ;;  %2118 = vmatpush1.bf16.msra.mxu0 %v6085_v13  ;;  %v6174_v13 = vld [vmem:[#allocation4 + $0x624] ss:$56 sps:$4 sm:$0xff]  }
 0x1c7   :  { %5174 = vmatprep.mubr.msk.bf16.mxu0 %vm6860_vm4, %v6709_v61  ;;  %3279 = vmatpush1.bf16.msra.mxu1 %v6088_v14  ;;  %v6169_v14 = vld [vmem:[#allocation6 + $0x650] ss:$56 sps:$4 sm:$0xff]  }
 0x1c8   :  { %5402 = vmatprep.mubr.msk.bf16.mxu1 %vm6860_vm4, %v6709_v61  ;;  %2119 = vmatprep.subr.bf16.mxu0 %v6093_v15  ;;  %v6172_v15 = vld [vmem:[#allocation4 + $0x620] ss:$56 sps:$4 sm:$0xff]  }
 0x1c9   :  { %3280 = vmatprep.subr.bf16.mxu1 %v6096_v16  ;;  %v6177_v16 = vld [vmem:[#allocation6 + $0x6c4] ss:$56 sps:$4 sm:$0xff]  }
 0x1ca   :  { %2120 = vmatpush1.bf16.msra.mxu0 %v6091_v17  ;;  %v6180_v17 = vld [vmem:[#allocation4 + $0x694] ss:$56 sps:$4 sm:$0xff]  }
 0x1cb   :  { %3281 = vmatpush1.bf16.msra.mxu1 %v6094_v18  ;;  %2121 = vmatprep.subr.bf16.mxu0 %v6099_v19  ;;  %v6175_v18 = vld [vmem:[#allocation6 + $0x6c0] ss:$56 sps:$4 sm:$0xff]   ;;  %v6178_v19 = vld [vmem:[#allocation4 + $0x690] ss:$56 sps:$4 sm:$0xff]  }
 0x1cc   :  { %3282 = vmatprep.subr.bf16.mxu1 %v6102_v20  ;;  %v6183_v20 = vld [vmem:[#allocation4 + $0xc] ss:$56 sps:$4 sm:$0xff]  }
 0x1ce   :  { %2122 = vmatpush1.bf16.msra.mxu0 %v6097_v21  ;;  %v6186_v21 = vld [vmem:[#allocation4 + $0x14] ss:$56 sps:$4 sm:$0xff]  }
 0x1cf   :  { %3283 = vmatpush1.bf16.msra.mxu1 %v6100_v22  ;;  %2123 = vmatprep.subr.bf16.mxu0 %v6105_v23  ;;  %v6181_v22 = vld [vmem:[#allocation4 + $0x8] ss:$56 sps:$4 sm:$0xff]  }
 0x1d0   :  { %3284 = vmatprep.subr.bf16.mxu1 %v6108_v24  ;;  %v6184_v23 = vld [vmem:[#allocation4 + $0x10] ss:$56 sps:$4 sm:$0xff]   ;;  %v6189_v24 = vld [vmem:[#allocation4 + $0x7c] ss:$56 sps:$4 sm:$0xff]  }
 0x1d2   :  { %2124 = vmatpush1.bf16.msra.mxu0 %v6103_v25  ;;  %v6192_v25 = vld [vmem:[#allocation4 + $0x84] ss:$56 sps:$4 sm:$0xff]  }
 0x1d3   :  { %3285 = vmatpush1.bf16.msra.mxu1 %v6106_v26  ;;  %2125 = vmatprep.subr.bf16.mxu0 %v6111_v27  ;;  %v6187_v26 = vld [vmem:[#allocation4 + $0x78] ss:$56 sps:$4 sm:$0xff]  }
 0x1d4   :  { %3286 = vmatprep.subr.bf16.mxu1 %v6114_v28  ;;  %v6190_v27 = vld [vmem:[#allocation4 + $0x80] ss:$56 sps:$4 sm:$0xff]   ;;  %v6195_v28 = vld [vmem:[#allocation4 + $0xec] ss:$56 sps:$4 sm:$0xff]  }
 0x1d6   :  { %2126 = vmatpush1.bf16.msra.mxu0 %v6109_v29  ;;  %v6198_v29 = vld [vmem:[#allocation4 + $0xf4] ss:$56 sps:$4 sm:$0xff]  }
 0x1d7   :  { %3287 = vmatpush1.bf16.msra.mxu1 %v6112_v30  ;;  %2127 = vmatprep.subr.bf16.mxu0 %v6117_v31  ;;  %v6193_v30 = vld [vmem:[#allocation4 + $0xe8] ss:$56 sps:$4 sm:$0xff]  }
 0x1d8   :  { %3288 = vmatprep.subr.bf16.mxu1 %v6120_v32  ;;  %v6196_v31 = vld [vmem:[#allocation4 + $0xf0] ss:$56 sps:$4 sm:$0xff]   ;;  %v6201_v32 = vld [vmem:[#allocation4 + $0x15c] ss:$56 sps:$4 sm:$0xff]  }
 0x1da   :  { %2128 = vmatpush1.bf16.msra.mxu0 %v6115_v33  ;;  %v6204_v33 = vld [vmem:[#allocation4 + $0x164] ss:$56 sps:$4 sm:$0xff]  }
 0x1db   :  { %3289 = vmatpush1.bf16.msra.mxu1 %v6118_v34  ;;  %2129 = vmatprep.subr.bf16.mxu0 %v6123_v36  ;;  %v6199_v34 = vld [vmem:[#allocation4 + $0x158] ss:$56 sps:$4 sm:$0xff]  }
 0x1dc   :  { %3290 = vmatprep.subr.bf16.mxu1 %v6126_v41  ;;  %v6202_v36 = vld [vmem:[#allocation4 + $0x160] ss:$56 sps:$4 sm:$0xff]   ;;  %v6207_v41 = vld [vmem:[#allocation4 + $0x1cc] ss:$56 sps:$4 sm:$0xff]  }
 0x1de   :  { %2130 = vmatpush1.bf16.msra.mxu0 %v6121_v42  ;;  %v6210_v42 = vld [vmem:[#allocation4 + $0x1d4] ss:$56 sps:$4 sm:$0xff]  }
 0x1df   :  { %3291 = vmatpush1.bf16.msra.mxu1 %v6124_v43  ;;  %2131 = vmatprep.subr.bf16.mxu0 %v6129_v44  ;;  %v6205_v43 = vld [vmem:[#allocation4 + $0x1c8] ss:$56 sps:$4 sm:$0xff]  }
 0x1e0   :  { %3292 = vmatprep.subr.bf16.mxu1 %v6132_v45  ;;  %v6208_v44 = vld [vmem:[#allocation4 + $0x1d0] ss:$56 sps:$4 sm:$0xff]   ;;  %v6213_v45 = vld [vmem:[#allocation4 + $0x23c] ss:$56 sps:$4 sm:$0xff]  }
 0x1e2   :  { %2132 = vmatpush1.bf16.msra.mxu0 %v6127_v46  ;;  %v6216_v46 = vld [vmem:[#allocation4 + $0x244] ss:$56 sps:$4 sm:$0xff]  }
 0x1e3   :  { %3293 = vmatpush1.bf16.msra.mxu1 %v6130_v47  ;;  %2133 = vmatprep.subr.bf16.mxu0 %v6135_v48  ;;  %v6211_v47 = vld [vmem:[#allocation4 + $0x238] ss:$56 sps:$4 sm:$0xff]  }
 0x1e4   :  { %3294 = vmatprep.subr.bf16.mxu1 %v6138_v49  ;;  %v6214_v48 = vld [vmem:[#allocation4 + $0x240] ss:$56 sps:$4 sm:$0xff]   ;;  %v6219_v49 = vld [vmem:[#allocation4 + $0x2ac] ss:$56 sps:$4 sm:$0xff]  }
 0x1e6   :  { %2134 = vmatpush1.bf16.msra.mxu0 %v6133_v50 }
 0x1e7   :  { %3295 = vmatpush1.bf16.msra.mxu1 %v6136_v51  ;;  %2135 = vmatprep.subr.bf16.mxu0 %v6141_v52  ;;  %v6222_v52 = vld [vmem:[#allocation4 + $0x2b4] ss:$56 sps:$4 sm:$0xff]  }
 0x1e8   :  { %3296 = vmatprep.subr.bf16.mxu1 %v6144_v53 }
 0x1ea   :  { %2136 = vmatpush1.bf16.msra.mxu0 %v6139_v54 }
 0x1eb   :  { %3297 = vmatpush1.bf16.msra.mxu1 %v6142_v55  ;;  %2137 = vmatprep.subr.bf16.mxu0 %v6147_v56 }
 0x1ec   :  { %3298 = vmatprep.subr.bf16.mxu1 %v6150_v57  ;;  %v6217_v57 = vld [vmem:[#allocation4 + $0x2a8] ss:$56 sps:$4 sm:$0xff]  }
 0x1ee   :  { %2138 = vmatpush1.bf16.msra.mxu0 %v6145_v58 }
 0x1ef   :  { %3299 = vmatpush1.bf16.msra.mxu1 %v6148_v62  ;;  %2139 = vmatprep.subr.bf16.mxu0 %v6153_v63  ;;  %v6220_v63 = vld [vmem:[#allocation4 + $0x2b0] ss:$56 sps:$4 sm:$0xff]  }
 0x1f0   :  { %3300 = vmatprep.subr.bf16.mxu1 %v6156_v1  ;;  %v6225_v1 = vld [vmem:[#allocation4 + $0x31c] ss:$56 sps:$4 sm:$0xff]  }
 0x1f2   :  { %2140 = vmatpush1.bf16.msra.mxu0 %v6151_v2  ;;  %v6228_v2 = vld [vmem:[#allocation4 + $0x324] ss:$56 sps:$4 sm:$0xff]  }
 0x1f3   :  { %3301 = vmatpush1.bf16.msra.mxu1 %v6154_v3  ;;  %2141 = vmatprep.subr.bf16.mxu0 %v6159_v4  ;;  %v6223_v3 = vld [vmem:[#allocation4 + $0x318] ss:$56 sps:$4 sm:$0xff]  }
 0x1f4   :  { %3302 = vmatprep.subr.bf16.mxu1 %v6162_v5  ;;  %v6226_v4 = vld [vmem:[#allocation4 + $0x320] ss:$56 sps:$4 sm:$0xff]   ;;  %v6231_v5 = vld [vmem:[#allocation4 + $0x38c] ss:$56 sps:$4 sm:$0xff]  }
 0x1f6   :  { %2142 = vmatpush1.bf16.msra.mxu0 %v6157_v6  ;;  %v6234_v6 = vld [vmem:[#allocation4 + $0x394] ss:$56 sps:$4 sm:$0xff]  }
 0x1f7   :  { %3303 = vmatpush1.bf16.msra.mxu1 %v6160_v7  ;;  %2143 = vmatprep.subr.bf16.mxu0 %v6165_v8  ;;  %v6229_v7 = vld [vmem:[#allocation4 + $0x388] ss:$56 sps:$4 sm:$0xff]  }
 0x1f8   :  { %3304 = vmatprep.subr.bf16.mxu1 %v6168_v9  ;;  %v6232_v8 = vld [vmem:[#allocation4 + $0x390] ss:$56 sps:$4 sm:$0xff]   ;;  %v6237_v9 = vld [vmem:[#allocation4 + $0x3fc] ss:$56 sps:$4 sm:$0xff]  }
 0x1fa   :  { %2144 = vmatpush1.bf16.msra.mxu0 %v6163_v10  ;;  %v6240_v10 = vld [vmem:[#allocation4 + $0x404] ss:$56 sps:$4 sm:$0xff]  }
 0x1fb   :  { %3305 = vmatpush1.bf16.msra.mxu1 %v6166_v11  ;;  %2145 = vmatprep.subr.bf16.mxu0 %v6171_v12  ;;  %v6235_v11 = vld [vmem:[#allocation4 + $0x3f8] ss:$56 sps:$4 sm:$0xff]  }
 0x1fc   :  { %3306 = vmatprep.subr.bf16.mxu1 %v6174_v13  ;;  %v6238_v12 = vld [vmem:[#allocation4 + $0x400] ss:$56 sps:$4 sm:$0xff]   ;;  %v6243_v13 = vld [vmem:[#allocation4 + $0x46c] ss:$56 sps:$4 sm:$0xff]  }
 0x1fe   :  { %2146 = vmatpush1.bf16.msra.mxu0 %v6169_v14  ;;  %v6246_v14 = vld [vmem:[#allocation4 + $0x474] ss:$56 sps:$4 sm:$0xff]  }
 0x1ff   :  { %3307 = vmatpush1.bf16.msra.mxu1 %v6172_v15  ;;  %2147 = vmatprep.subr.bf16.mxu0 %v6177_v16  ;;  %v6241_v15 = vld [vmem:[#allocation4 + $0x468] ss:$56 sps:$4 sm:$0xff]  }
 0x200   :  { %3308 = vmatprep.subr.bf16.mxu1 %v6180_v17  ;;  %v6244_v16 = vld [vmem:[#allocation4 + $0x470] ss:$56 sps:$4 sm:$0xff]   ;;  %v6249_v17 = vld [vmem:[#allocation4 + $0x4dc] ss:$56 sps:$4 sm:$0xff]  }
 0x202   :  { %2148 = vmatpush1.bf16.msra.mxu0 %v6175_v18  ;;  %v6252_v18 = vld [vmem:[#allocation4 + $0x4e4] ss:$56 sps:$4 sm:$0xff]  }
 0x203   :  { %3309 = vmatpush1.bf16.msra.mxu1 %v6178_v19  ;;  %3319 = vmatprep.subr.bf16.mxu0 %v6183_v20  ;;  %v6247_v19 = vld [vmem:[#allocation4 + $0x4d8] ss:$56 sps:$4 sm:$0xff]  }
 0x204   :  { %3360 = vmatprep.subr.bf16.mxu1 %v6186_v21  ;;  %v6250_v20 = vld [vmem:[#allocation4 + $0x4e0] ss:$56 sps:$4 sm:$0xff]   ;;  %v6255_v21 = vld [vmem:[#allocation4 + $0x54c] ss:$56 sps:$4 sm:$0xff]  }
 0x205   :  { %5176 = vmatmul.mubr.msk.bf16.vlgmr.msra.gmra.mrb[16].mxu0 %vm6864_vm5, %v6709_v61 }
 0x206   :  { %5404 = vmatmul.mubr.msk.bf16.vlgmr.msra.gmra.mrb[16].mxu1 %vm6864_vm5, %v6709_v61  ;;  %3320 = vmatpush1.bf16.msra.mxu0 %v6181_v22  ;;  %v6258_v22 = vld [vmem:[#allocation4 + $0x554] ss:$56 sps:$4 sm:$0xff]  }
 0x207   :  { %5406 = vmatprep.mubr.msk.bf16.mxu0 %vm6860_vm4, %v6709_v61  ;;  %3361 = vmatpush1.bf16.msra.mxu1 %v6184_v23  ;;  %v6253_v23 = vld [vmem:[#allocation4 + $0x548] ss:$56 sps:$4 sm:$0xff]  }
 0x208   :  { %5410 = vmatprep.mubr.msk.bf16.mxu1 %vm6860_vm4, %v6709_v61  ;;  %3321 = vmatprep.subr.bf16.mxu0 %v6189_v24  ;;  %v6256_v24 = vld [vmem:[#allocation4 + $0x550] ss:$56 sps:$4 sm:$0xff]  }
 0x209   :  { %3362 = vmatprep.subr.bf16.mxu1 %v6192_v25  ;;  %v6261_v25 = vld [vmem:[#allocation4 + $0x5bc] ss:$56 sps:$4 sm:$0xff]  }
 0x20a   :  { %3322 = vmatpush1.bf16.msra.mxu0 %v6187_v26  ;;  %v6264_v26 = vld [vmem:[#allocation4 + $0x5c4] ss:$56 sps:$4 sm:$0xff]  }
 0x20b   :  { %3363 = vmatpush1.bf16.msra.mxu1 %v6190_v27  ;;  %3323 = vmatprep.subr.bf16.mxu0 %v6195_v28  ;;  %v6259_v27 = vld [vmem:[#allocation4 + $0x5b8] ss:$56 sps:$4 sm:$0xff]  }
 0x20c   :  { %3364 = vmatprep.subr.bf16.mxu1 %v6198_v29  ;;  %v6262_v28 = vld [vmem:[#allocation4 + $0x5c0] ss:$56 sps:$4 sm:$0xff]   ;;  %v6267_v29 = vld [vmem:[#allocation4 + $0x62c] ss:$56 sps:$4 sm:$0xff]  }
 0x20e   :  { %3324 = vmatpush1.bf16.msra.mxu0 %v6193_v30  ;;  %v6270_v30 = vld [vmem:[#allocation4 + $0x634] ss:$56 sps:$4 sm:$0xff]  }
 0x20f   :  { %3365 = vmatpush1.bf16.msra.mxu1 %v6196_v31  ;;  %3325 = vmatprep.subr.bf16.mxu0 %v6201_v32  ;;  %v6265_v31 = vld [vmem:[#allocation4 + $0x628] ss:$56 sps:$4 sm:$0xff]  }
 0x210   :  { %3366 = vmatprep.subr.bf16.mxu1 %v6204_v33  ;;  %v6268_v32 = vld [vmem:[#allocation4 + $0x630] ss:$56 sps:$4 sm:$0xff]   ;;  %v6273_v33 = vld [vmem:[#allocation4 + $0x69c] ss:$56 sps:$4 sm:$0xff]  }
 0x212   :  { %3326 = vmatpush1.bf16.msra.mxu0 %v6199_v34  ;;  %v6276_v34 = vld [vmem:[#allocation4 + $0x6a4] ss:$56 sps:$4 sm:$0xff]  }
 0x213   :  { %3367 = vmatpush1.bf16.msra.mxu1 %v6202_v36  ;;  %3327 = vmatprep.subr.bf16.mxu0 %v6207_v41  ;;  %v6271_v36 = vld [vmem:[#allocation4 + $0x698] ss:$56 sps:$4 sm:$0xff]  }
 0x214   :  { %3368 = vmatprep.subr.bf16.mxu1 %v6210_v42  ;;  %v6274_v41 = vld [vmem:[#allocation4 + $0x6a0] ss:$56 sps:$4 sm:$0xff]   ;;  %v6279_v42 = vld [vmem:[#allocation4 + $0x1c] ss:$56 sps:$4 sm:$0xff]  }
 0x216   :  { %3328 = vmatpush1.bf16.msra.mxu0 %v6205_v43  ;;  %v6282_v43 = vld [vmem:[#allocation4 + $0x24] ss:$56 sps:$4 sm:$0xff]  }
 0x217   :  { %3369 = vmatpush1.bf16.msra.mxu1 %v6208_v44  ;;  %3329 = vmatprep.subr.bf16.mxu0 %v6213_v45  ;;  %v6277_v44 = vld [vmem:[#allocation4 + $0x18] ss:$56 sps:$4 sm:$0xff]  }
 0x218   :  { %v6922_v50 = vpop.f32.mrb[4].mxu0  ;;  %v6924_v51 = vpop.f32.mrb[4].mxu1  ;;  %3370 = vmatprep.subr.bf16.mxu1 %v6216_v46  ;;  %v6280_v45 = vld [vmem:[#allocation4 + $0x20] ss:$56 sps:$4 sm:$0xff]   ;;  %v6285_v46 = vld [vmem:[#allocation4 + $0x8c] ss:$56 sps:$4 sm:$0xff]  }
 0x219   :  { %v6926_v53 = vpop.f32.mrb[5].mxu0  ;;  %v6928_v54 = vpop.f32.mrb[5].mxu1 }
 0x21a   :  { %3330 = vmatpush1.bf16.msra.mxu0 %v6211_v47  ;;  %v1909_v55 = vpop.f32.mrb[6].mxu0  ;;  %v1950_v56 = vpop.f32.mrb[6].mxu1  ;;  %v6288_v47 = vld [vmem:[#allocation4 + $0x94] ss:$56 sps:$4 sm:$0xff]  }
 0x21b   :  { %3371 = vmatpush1.bf16.msra.mxu1 %v6214_v48  ;;  %v1910_v58 = vpop.f32.mrb[7].mxu0  ;;  %v1951_v62 = vpop.f32.mrb[7].mxu1  ;;  %3331 = vmatprep.subr.bf16.mxu0 %v6219_v49  ;;  %v6283_v48 = vld [vmem:[#allocation4 + $0x88] ss:$56 sps:$4 sm:$0xff]   ;;  %v6294_v55 = vld [vmem:[#allocation4 + $0x104] ss:$56 sps:$4 sm:$0xff]  }
 0x21c   :  { %3372 = vmatprep.subr.bf16.mxu1 %v6222_v52  ;;  %v6286_v49 = vld [vmem:[#allocation4 + $0x90] ss:$56 sps:$4 sm:$0xff]   ;;  %v6291_v52 = vld [vmem:[#allocation4 + $0xfc] ss:$56 sps:$4 sm:$0xff]   ;;  %v6297_v58 = vld [vmem:[#allocation4 + $0x16c] ss:$56 sps:$4 sm:$0xff]  }
 0x21d   :  { %v6289_v56 = vld [vmem:[#allocation4 + $0xf8] ss:$56 sps:$4 sm:$0xff]   ;;  %v6300_v62 = vld [vmem:[#allocation4 + $0x174] ss:$56 sps:$4 sm:$0xff]  }
 0x21e   :  { %3332 = vmatpush1.bf16.msra.mxu0 %v6217_v57  ;;  %v6292_v57 = vld [vmem:[#allocation4 + $0x100] ss:$56 sps:$4 sm:$0xff]  }
 0x21f   :  { %3373 = vmatpush1.bf16.msra.mxu1 %v6220_v63  ;;  %3333 = vmatprep.subr.bf16.mxu0 %v6225_v1  ;;  %v6295_v63 = vld [vmem:[#allocation4 + $0x168] ss:$56 sps:$4 sm:$0xff]  }
 0x220   :  { %3374 = vmatprep.subr.bf16.mxu1 %v6228_v2  ;;  %v6298_v1 = vld [vmem:[#allocation4 + $0x170] ss:$56 sps:$4 sm:$0xff]   ;;  %v6303_v2 = vld [vmem:[#allocation4 + $0x1dc] ss:$56 sps:$4 sm:$0xff]  }
 0x222   :  { %3334 = vmatpush1.bf16.msra.mxu0 %v6223_v3  ;;  %v6306_v3 = vld [vmem:[#allocation4 + $0x1e4] ss:$56 sps:$4 sm:$0xff]  }
 0x223   :  { %3375 = vmatpush1.bf16.msra.mxu1 %v6226_v4  ;;  %3335 = vmatprep.subr.bf16.mxu0 %v6231_v5  ;;  %v6301_v4 = vld [vmem:[#allocation4 + $0x1d8] ss:$56 sps:$4 sm:$0xff]  }
 0x224   :  { %3376 = vmatprep.subr.bf16.mxu1 %v6234_v6  ;;  %v6304_v5 = vld [vmem:[#allocation4 + $0x1e0] ss:$56 sps:$4 sm:$0xff]   ;;  %v6309_v6 = vld [vmem:[#allocation4 + $0x24c] ss:$56 sps:$4 sm:$0xff]  }
 0x226   :  { %3336 = vmatpush1.bf16.msra.mxu0 %v6229_v7  ;;  %v6312_v7 = vld [vmem:[#allocation4 + $0x254] ss:$56 sps:$4 sm:$0xff]  }
 0x227   :  { %3377 = vmatpush1.bf16.msra.mxu1 %v6232_v8  ;;  %3337 = vmatprep.subr.bf16.mxu0 %v6237_v9  ;;  %v6307_v8 = vld [vmem:[#allocation4 + $0x248] ss:$56 sps:$4 sm:$0xff]  }
 0x228   :  { %3378 = vmatprep.subr.bf16.mxu1 %v6240_v10  ;;  %v6310_v9 = vld [vmem:[#allocation4 + $0x250] ss:$56 sps:$4 sm:$0xff]   ;;  %v6315_v10 = vld [vmem:[#allocation4 + $0x2bc] ss:$56 sps:$4 sm:$0xff]  }
 0x22a   :  { %3338 = vmatpush1.bf16.msra.mxu0 %v6235_v11 }
 0x22b   :  { %3379 = vmatpush1.bf16.msra.mxu1 %v6238_v12  ;;  %3339 = vmatprep.subr.bf16.mxu0 %v6243_v13  ;;  %v6318_v13 = vld [vmem:[#allocation4 + $0x2c4] ss:$56 sps:$4 sm:$0xff]  }
 0x22c   :  { %3380 = vmatprep.subr.bf16.mxu1 %v6246_v14 }
 0x22e   :  { %3340 = vmatpush1.bf16.msra.mxu0 %v6241_v15 }
 0x22f   :  { %3381 = vmatpush1.bf16.msra.mxu1 %v6244_v16  ;;  %3341 = vmatprep.subr.bf16.mxu0 %v6249_v17 }
 0x230   :  { %3382 = vmatprep.subr.bf16.mxu1 %v6252_v18  ;;  %v6313_v18 = vld [vmem:[#allocation4 + $0x2b8] ss:$56 sps:$4 sm:$0xff]  }
 0x232   :  { %3342 = vmatpush1.bf16.msra.mxu0 %v6247_v19 }
 0x233   :  { %3383 = vmatpush1.bf16.msra.mxu1 %v6250_v20  ;;  %3343 = vmatprep.subr.bf16.mxu0 %v6255_v21  ;;  %v6316_v21 = vld [vmem:[#allocation4 + $0x2c0] ss:$56 sps:$4 sm:$0xff]  }
 0x234   :  { %3384 = vmatprep.subr.bf16.mxu1 %v6258_v22  ;;  %v6321_v22 = vld [vmem:[#allocation4 + $0x32c] ss:$56 sps:$4 sm:$0xff]  }
 0x236   :  { %3344 = vmatpush1.bf16.msra.mxu0 %v6253_v23  ;;  %v6324_v23 = vld [vmem:[#allocation4 + $0x334] ss:$56 sps:$4 sm:$0xff]  }
 0x237   :  { %3385 = vmatpush1.bf16.msra.mxu1 %v6256_v24  ;;  %3345 = vmatprep.subr.bf16.mxu0 %v6261_v25  ;;  %v6319_v24 = vld [vmem:[#allocation4 + $0x328] ss:$56 sps:$4 sm:$0xff]  }
 0x238   :  { %3386 = vmatprep.subr.bf16.mxu1 %v6264_v26  ;;  %v6322_v25 = vld [vmem:[#allocation4 + $0x330] ss:$56 sps:$4 sm:$0xff]   ;;  %v6327_v26 = vld [vmem:[#allocation4 + $0x39c] ss:$56 sps:$4 sm:$0xff]  }
 0x23a   :  { %3346 = vmatpush1.bf16.msra.mxu0 %v6259_v27  ;;  %v6330_v27 = vld [vmem:[#allocation4 + $0x3a4] ss:$56 sps:$4 sm:$0xff]  }
 0x23b   :  { %3387 = vmatpush1.bf16.msra.mxu1 %v6262_v28  ;;  %3347 = vmatprep.subr.bf16.mxu0 %v6267_v29  ;;  %v6325_v28 = vld [vmem:[#allocation4 + $0x398] ss:$56 sps:$4 sm:$0xff]  }
 0x23c   :  { %3388 = vmatprep.subr.bf16.mxu1 %v6270_v30  ;;  %v6328_v29 = vld [vmem:[#allocation4 + $0x3a0] ss:$56 sps:$4 sm:$0xff]   ;;  %v6333_v30 = vld [vmem:[#allocation4 + $0x40c] ss:$56 sps:$4 sm:$0xff]  }
 0x23e   :  { %3348 = vmatpush1.bf16.msra.mxu0 %v6265_v31  ;;  %v6336_v31 = vld [vmem:[#allocation4 + $0x414] ss:$56 sps:$4 sm:$0xff]  }
 0x23f   :  { %3389 = vmatpush1.bf16.msra.mxu1 %v6268_v32  ;;  %3349 = vmatprep.subr.bf16.mxu0 %v6273_v33  ;;  %v6331_v32 = vld [vmem:[#allocation4 + $0x408] ss:$56 sps:$4 sm:$0xff]  }
 0x240   :  { %3390 = vmatprep.subr.bf16.mxu1 %v6276_v34  ;;  %v6334_v33 = vld [vmem:[#allocation4 + $0x410] ss:$56 sps:$4 sm:$0xff]   ;;  %v6339_v34 = vld [vmem:[#allocation4 + $0x47c] ss:$56 sps:$4 sm:$0xff]  }
 0x242   :  { %3350 = vmatpush1.bf16.msra.mxu0 %v6271_v36  ;;  %v6342_v36 = vld [vmem:[#allocation4 + $0x484] ss:$56 sps:$4 sm:$0xff]  }
 0x243   :  { %3391 = vmatpush1.bf16.msra.mxu1 %v6274_v41  ;;  %3401 = vmatprep.subr.bf16.mxu0 %v6279_v42  ;;  %v6337_v41 = vld [vmem:[#allocation4 + $0x478] ss:$56 sps:$4 sm:$0xff]  }
 0x244   :  { %3442 = vmatprep.subr.bf16.mxu1 %v6282_v43  ;;  %v6340_v42 = vld [vmem:[#allocation4 + $0x480] ss:$56 sps:$4 sm:$0xff]   ;;  %v6345_v43 = vld [vmem:[#allocation4 + $0x4ec] ss:$56 sps:$4 sm:$0xff]  }
 0x245   :  { %5408 = vmatmul.mubr.msk.bf16.vlgmr.msra.gmra.mrb[20].mxu0 %vm6864_vm5, %v6709_v61 }
 0x246   :  { %5412 = vmatmul.mubr.msk.bf16.vlgmr.msra.gmra.mrb[20].mxu1 %vm6864_vm5, %v6709_v61  ;;  %3402 = vmatpush1.bf16.msra.mxu0 %v6277_v44  ;;  %v6348_v44 = vld [vmem:[#allocation4 + $0x4f4] ss:$56 sps:$4 sm:$0xff]  }
 0x247   :  { %5414 = vmatprep.mubr.msk.bf16.mxu0 %vm6860_vm4, %v6709_v61  ;;  %3443 = vmatpush1.bf16.msra.mxu1 %v6280_v45  ;;  %v6343_v45 = vld [vmem:[#allocation4 + $0x4e8] ss:$56 sps:$4 sm:$0xff]  }
 0x248   :  { %5418 = vmatprep.mubr.msk.bf16.mxu1 %vm6860_vm4, %v6709_v61  ;;  %3403 = vmatprep.subr.bf16.mxu0 %v6285_v46  ;;  %v6346_v46 = vld [vmem:[#allocation4 + $0x4f0] ss:$56 sps:$4 sm:$0xff]  }
 0x249   :  { %3444 = vmatprep.subr.bf16.mxu1 %v6288_v47  ;;  %v6351_v47 = vld [vmem:[#allocation4 + $0x55c] ss:$56 sps:$4 sm:$0xff]  }
 0x24a   :  { %3404 = vmatpush1.bf16.msra.mxu0 %v6283_v48  ;;  %v6354_v48 = vld [vmem:[#allocation4 + $0x564] ss:$56 sps:$4 sm:$0xff]  }
 0x24b   :  { %3445 = vmatpush1.bf16.msra.mxu1 %v6286_v49  ;;  %3405 = vmatprep.subr.bf16.mxu0 %v6291_v52  ;;  %v6349_v49 = vld [vmem:[#allocation4 + $0x558] ss:$56 sps:$4 sm:$0xff]  }
 0x24c   :  { %3446 = vmatprep.subr.bf16.mxu1 %v6294_v55  ;;  %v6352_v52 = vld [vmem:[#allocation4 + $0x560] ss:$56 sps:$4 sm:$0xff]   ;;  %v6357_v55 = vld [vmem:[#allocation4 + $0x5cc] ss:$56 sps:$4 sm:$0xff]  }
 0x24e   :  { %3406 = vmatpush1.bf16.msra.mxu0 %v6289_v56  ;;  %v6360_v56 = vld [vmem:[#allocation4 + $0x5d4] ss:$56 sps:$4 sm:$0xff]  }
 0x24f   :  { %3447 = vmatpush1.bf16.msra.mxu1 %v6292_v57  ;;  %3407 = vmatprep.subr.bf16.mxu0 %v6297_v58  ;;  %v6355_v57 = vld [vmem:[#allocation4 + $0x5c8] ss:$56 sps:$4 sm:$0xff]  }
 0x250   :  { %3448 = vmatprep.subr.bf16.mxu1 %v6300_v62  ;;  %v6358_v58 = vld [vmem:[#allocation4 + $0x5d0] ss:$56 sps:$4 sm:$0xff]   ;;  %v6363_v62 = vld [vmem:[#allocation4 + $0x63c] ss:$56 sps:$4 sm:$0xff]  }
 0x252   :  { %3408 = vmatpush1.bf16.msra.mxu0 %v6295_v63  ;;  %v6366_v63 = vld [vmem:[#allocation4 + $0x644] ss:$56 sps:$4 sm:$0xff]  }
 0x253   :  { %3449 = vmatpush1.bf16.msra.mxu1 %v6298_v1  ;;  %3409 = vmatprep.subr.bf16.mxu0 %v6303_v2  ;;  %v6361_v1 = vld [vmem:[#allocation4 + $0x638] ss:$56 sps:$4 sm:$0xff]  }
 0x254   :  { %3450 = vmatprep.subr.bf16.mxu1 %v6306_v3  ;;  %v6364_v2 = vld [vmem:[#allocation4 + $0x640] ss:$56 sps:$4 sm:$0xff]   ;;  %v6369_v3 = vld [vmem:[#allocation4 + $0x6ac] ss:$56 sps:$4 sm:$0xff]  }
 0x256   :  { %3410 = vmatpush1.bf16.msra.mxu0 %v6301_v4  ;;  %v6372_v4 = vld [vmem:[#allocation4 + $0x6b4] ss:$56 sps:$4 sm:$0xff]  }
 0x257   :  { %3451 = vmatpush1.bf16.msra.mxu1 %v6304_v5  ;;  %3411 = vmatprep.subr.bf16.mxu0 %v6309_v6  ;;  %v6367_v5 = vld [vmem:[#allocation4 + $0x6a8] ss:$56 sps:$4 sm:$0xff]  }
 0x258   :  { %v6942_v11 = vpop.f32.mrb[8].mxu0  ;;  %v6944_v12 = vpop.f32.mrb[8].mxu1  ;;  %3452 = vmatprep.subr.bf16.mxu1 %v6312_v7  ;;  %v6370_v6 = vld [vmem:[#allocation4 + $0x6b0] ss:$56 sps:$4 sm:$0xff]   ;;  %v6375_v7 = vld [vmem:[#allocation4 + $0x2c] ss:$56 sps:$4 sm:$0xff]  }
 0x259   :  { %v6946_v14 = vpop.f32.mrb[9].mxu0  ;;  %v6948_v15 = vpop.f32.mrb[9].mxu1 }
 0x25a   :  { %v1991_v16 = vpop.f32.mrb[10].mxu0  ;;  %v2032_v17 = vpop.f32.mrb[10].mxu1  ;;  %3412 = vmatpush1.bf16.msra.mxu0 %v6307_v8  ;;  %v6378_v8 = vld [vmem:[#allocation4 + $0x34] ss:$56 sps:$4 sm:$0xff]  }
 0x25b   :  { %3453 = vmatpush1.bf16.msra.mxu1 %v6310_v9  ;;  %v1992_v19 = vpop.f32.mrb[11].mxu0  ;;  %v2033_v20 = vpop.f32.mrb[11].mxu1  ;;  %3413 = vmatprep.subr.bf16.mxu0 %v6315_v10  ;;  %v6373_v9 = vld [vmem:[#allocation4 + $0x28] ss:$56 sps:$4 sm:$0xff]   ;;  %v6384_v16 = vld [vmem:[#allocation4 + $0xa4] ss:$56 sps:$4 sm:$0xff]  }
 0x25c   :  { %3454 = vmatprep.subr.bf16.mxu1 %v6318_v13  ;;  %v6376_v10 = vld [vmem:[#allocation4 + $0x30] ss:$56 sps:$4 sm:$0xff]   ;;  %v6381_v13 = vld [vmem:[#allocation4 + $0x9c] ss:$56 sps:$4 sm:$0xff]   ;;  %v6387_v19 = vld [vmem:[#allocation4 + $0x10c] ss:$56 sps:$4 sm:$0xff]  }
 0x25d   :  { %v6379_v17 = vld [vmem:[#allocation4 + $0x98] ss:$56 sps:$4 sm:$0xff]   ;;  %v6390_v20 = vld [vmem:[#allocation4 + $0x114] ss:$56 sps:$4 sm:$0xff]  }
 0x25e   :  { %3414 = vmatpush1.bf16.msra.mxu0 %v6313_v18  ;;  %v6382_v18 = vld [vmem:[#allocation4 + $0xa0] ss:$56 sps:$4 sm:$0xff]  }
 0x25f   :  { %3455 = vmatpush1.bf16.msra.mxu1 %v6316_v21  ;;  %3415 = vmatprep.subr.bf16.mxu0 %v6321_v22  ;;  %v6385_v21 = vld [vmem:[#allocation4 + $0x108] ss:$56 sps:$4 sm:$0xff]  }
 0x260   :  { %3456 = vmatprep.subr.bf16.mxu1 %v6324_v23  ;;  %v6388_v22 = vld [vmem:[#allocation4 + $0x110] ss:$56 sps:$4 sm:$0xff]   ;;  %v6393_v23 = vld [vmem:[#allocation4 + $0x17c] ss:$56 sps:$4 sm:$0xff]  }
 0x262   :  { %3416 = vmatpush1.bf16.msra.mxu0 %v6319_v24  ;;  %v6396_v24 = vld [vmem:[#allocation4 + $0x184] ss:$56 sps:$4 sm:$0xff]  }
 0x263   :  { %3457 = vmatpush1.bf16.msra.mxu1 %v6322_v25  ;;  %3417 = vmatprep.subr.bf16.mxu0 %v6327_v26  ;;  %v6391_v25 = vld [vmem:[#allocation4 + $0x178] ss:$56 sps:$4 sm:$0xff]  }
 0x264   :  { %3458 = vmatprep.subr.bf16.mxu1 %v6330_v27  ;;  %v6394_v26 = vld [vmem:[#allocation4 + $0x180] ss:$56 sps:$4 sm:$0xff]   ;;  %v6399_v27 = vld [vmem:[#allocation4 + $0x1ec] ss:$56 sps:$4 sm:$0xff]  }
 0x266   :  { %3418 = vmatpush1.bf16.msra.mxu0 %v6325_v28  ;;  %v6397_v28 = vld [vmem:[#allocation4 + $0x1e8] ss:$56 sps:$4 sm:$0xff]  }
 0x267   :  { %3459 = vmatpush1.bf16.msra.mxu1 %v6328_v29  ;;  %3419 = vmatprep.subr.bf16.mxu0 %v6333_v30  ;;  %v6400_v29 = vld [vmem:[#allocation4 + $0x1f0] ss:$56 sps:$4 sm:$0xff]   ;;  %v6405_v30 = vld [vmem:[#allocation4 + $0x25c] ss:$56 sps:$4 sm:$0xff]  }
 0x268   :  { %3460 = vmatprep.subr.bf16.mxu1 %v6336_v31  ;;  %v6408_v31 = vld [vmem:[#allocation4 + $0x264] ss:$56 sps:$4 sm:$0xff]  }
 0x26a   :  { %3420 = vmatpush1.bf16.msra.mxu0 %v6331_v32  ;;  %v6403_v32 = vld [vmem:[#allocation4 + $0x258] ss:$56 sps:$4 sm:$0xff]  }
 0x26b   :  { %3461 = vmatpush1.bf16.msra.mxu1 %v6334_v33  ;;  %3421 = vmatprep.subr.bf16.mxu0 %v6339_v34  ;;  %v6406_v33 = vld [vmem:[#allocation4 + $0x260] ss:$56 sps:$4 sm:$0xff]   ;;  %v6411_v34 = vld [vmem:[#allocation4 + $0x2cc] ss:$56 sps:$4 sm:$0xff]  }
 0x26c   :  { %3462 = vmatprep.subr.bf16.mxu1 %v6342_v36 }
 0x26e   :  { %3422 = vmatpush1.bf16.msra.mxu0 %v6337_v41  ;;  %v6414_v41 = vld [vmem:[#allocation4 + $0x2d4] ss:$56 sps:$4 sm:$0xff]  }
 0x26f   :  { %3463 = vmatpush1.bf16.msra.mxu1 %v6340_v42  ;;  %3423 = vmatprep.subr.bf16.mxu0 %v6345_v43 }
 0x270   :  { %3464 = vmatprep.subr.bf16.mxu1 %v6348_v44 }
 0x272   :  { %3424 = vmatpush1.bf16.msra.mxu0 %v6343_v45 }
 0x273   :  { %3465 = vmatpush1.bf16.msra.mxu1 %v6346_v46  ;;  %3425 = vmatprep.subr.bf16.mxu0 %v6351_v47  ;;  %v6409_v46 = vld [vmem:[#allocation4 + $0x2c8] ss:$56 sps:$4 sm:$0xff]  }
 0x274   :  { %3466 = vmatprep.subr.bf16.mxu1 %v6354_v48 }
 0x276   :  { %3426 = vmatpush1.bf16.msra.mxu0 %v6349_v49  ;;  %v6412_v49 = vld [vmem:[#allocation4 + $0x2d0] ss:$56 sps:$4 sm:$0xff]  }
 0x277   :  { %3467 = vmatpush1.bf16.msra.mxu1 %v6352_v52  ;;  %3427 = vmatprep.subr.bf16.mxu0 %v6357_v55  ;;  %v6417_v52 = vld [vmem:[#allocation4 + $0x33c] ss:$56 sps:$4 sm:$0xff]  }
 0x278   :  { %3468 = vmatprep.subr.bf16.mxu1 %v6360_v56  ;;  %v6420_v56 = vld [vmem:[#allocation4 + $0x344] ss:$56 sps:$4 sm:$0xff]  }
 0x27a   :  { %3428 = vmatpush1.bf16.msra.mxu0 %v6355_v57  ;;  %v6415_v57 = vld [vmem:[#allocation4 + $0x338] ss:$56 sps:$4 sm:$0xff]  }
 0x27b   :  { %3469 = vmatpush1.bf16.msra.mxu1 %v6358_v58  ;;  %3429 = vmatprep.subr.bf16.mxu0 %v6363_v62  ;;  %v6418_v58 = vld [vmem:[#allocation4 + $0x340] ss:$56 sps:$4 sm:$0xff]   ;;  %v6423_v62 = vld [vmem:[#allocation4 + $0x3ac] ss:$56 sps:$4 sm:$0xff]  }
 0x27c   :  { %3470 = vmatprep.subr.bf16.mxu1 %v6366_v63  ;;  %v6426_v63 = vld [vmem:[#allocation4 + $0x3b4] ss:$56 sps:$4 sm:$0xff]  }
 0x27e   :  { %3430 = vmatpush1.bf16.msra.mxu0 %v6361_v1  ;;  %v6421_v1 = vld [vmem:[#allocation4 + $0x3a8] ss:$56 sps:$4 sm:$0xff]  }
 0x27f   :  { %3471 = vmatpush1.bf16.msra.mxu1 %v6364_v2  ;;  %3431 = vmatprep.subr.bf16.mxu0 %v6369_v3  ;;  %v6424_v2 = vld [vmem:[#allocation4 + $0x3b0] ss:$56 sps:$4 sm:$0xff]   ;;  %v6429_v3 = vld [vmem:[#allocation4 + $0x41c] ss:$56 sps:$4 sm:$0xff]  }
 0x280   :  { %3472 = vmatprep.subr.bf16.mxu1 %v6372_v4  ;;  %v6432_v4 = vld [vmem:[#allocation4 + $0x424] ss:$56 sps:$4 sm:$0xff]  }
 0x282   :  { %3432 = vmatpush1.bf16.msra.mxu0 %v6367_v5  ;;  %v6427_v5 = vld [vmem:[#allocation4 + $0x418] ss:$56 sps:$4 sm:$0xff]  }
 0x283   :  { %3473 = vmatpush1.bf16.msra.mxu1 %v6370_v6  ;;  %3483 = vmatprep.subr.bf16.mxu0 %v6375_v7  ;;  %v6430_v6 = vld [vmem:[#allocation4 + $0x420] ss:$56 sps:$4 sm:$0xff]   ;;  %v6435_v7 = vld [vmem:[#allocation4 + $0x48c] ss:$56 sps:$4 sm:$0xff]  }
 0x284   :  { %3524 = vmatprep.subr.bf16.mxu1 %v6378_v8  ;;  %v6438_v8 = vld [vmem:[#allocation4 + $0x494] ss:$56 sps:$4 sm:$0xff]  }
 0x285   :  { %5416 = vmatmul.mubr.msk.bf16.vlgmr.msra.gmra.mrb[24].mxu0 %vm6864_vm5, %v6709_v61 }
 0x286   :  { %5420 = vmatmul.mubr.msk.bf16.vlgmr.msra.gmra.mrb[24].mxu1 %vm6864_vm5, %v6709_v61  ;;  %3484 = vmatpush1.bf16.msra.mxu0 %v6373_v9  ;;  %v6433_v9 = vld [vmem:[#allocation4 + $0x488] ss:$56 sps:$4 sm:$0xff]  }
 0x287   :  { %5422 = vmatprep.mubr.msk.bf16.mxu0 %vm6860_vm4, %v6709_v61  ;;  %3525 = vmatpush1.bf16.msra.mxu1 %v6376_v10  ;;  %v6436_v10 = vld [vmem:[#allocation4 + $0x490] ss:$56 sps:$4 sm:$0xff]  }
 0x288   :  { %5426 = vmatprep.mubr.msk.bf16.mxu1 %vm6860_vm4, %v6709_v61  ;;  %3485 = vmatprep.subr.bf16.mxu0 %v6381_v13  ;;  %v6441_v13 = vld [vmem:[#allocation4 + $0x4fc] ss:$56 sps:$4 sm:$0xff]  }
 0x289   :  { %3526 = vmatprep.subr.bf16.mxu1 %v6384_v16  ;;  %v6444_v16 = vld [vmem:[#allocation4 + $0x504] ss:$56 sps:$4 sm:$0xff]  }
 0x28a   :  { %3486 = vmatpush1.bf16.msra.mxu0 %v6379_v17  ;;  %v6439_v17 = vld [vmem:[#allocation4 + $0x4f8] ss:$56 sps:$4 sm:$0xff]  }
 0x28b   :  { %3527 = vmatpush1.bf16.msra.mxu1 %v6382_v18  ;;  %3487 = vmatprep.subr.bf16.mxu0 %v6387_v19  ;;  %v6442_v18 = vld [vmem:[#allocation4 + $0x500] ss:$56 sps:$4 sm:$0xff]   ;;  %v6447_v19 = vld [vmem:[#allocation4 + $0x56c] ss:$56 sps:$4 sm:$0xff]  }
 0x28c   :  { %3528 = vmatprep.subr.bf16.mxu1 %v6390_v20  ;;  %v6450_v20 = vld [vmem:[#allocation4 + $0x574] ss:$56 sps:$4 sm:$0xff]  }
 0x28e   :  { %3488 = vmatpush1.bf16.msra.mxu0 %v6385_v21  ;;  %v6445_v21 = vld [vmem:[#allocation4 + $0x568] ss:$56 sps:$4 sm:$0xff]  }
 0x28f   :  { %3529 = vmatpush1.bf16.msra.mxu1 %v6388_v22  ;;  %3489 = vmatprep.subr.bf16.mxu0 %v6393_v23  ;;  %v6448_v22 = vld [vmem:[#allocation4 + $0x570] ss:$56 sps:$4 sm:$0xff]   ;;  %v6453_v23 = vld [vmem:[#allocation4 + $0x5dc] ss:$56 sps:$4 sm:$0xff]  }
 0x290   :  { %3530 = vmatprep.subr.bf16.mxu1 %v6396_v24  ;;  %v6456_v24 = vld [vmem:[#allocation4 + $0x5e4] ss:$56 sps:$4 sm:$0xff]  }
 0x292   :  { %3490 = vmatpush1.bf16.msra.mxu0 %v6391_v25  ;;  %v6451_v25 = vld [vmem:[#allocation4 + $0x5d8] ss:$56 sps:$4 sm:$0xff]  }
 0x293   :  { %3531 = vmatpush1.bf16.msra.mxu1 %v6394_v26  ;;  %3491 = vmatprep.subr.bf16.mxu0 %v6399_v27  ;;  %v6454_v26 = vld [vmem:[#allocation4 + $0x5e0] ss:$56 sps:$4 sm:$0xff]   ;;  %v6459_v27 = vld [vmem:[#allocation4 + $0x64c] ss:$56 sps:$4 sm:$0xff]  }
 0x294   :  { %3532 = vmatprep.subr.bf16.mxu1 %v6402_v59  ;;  %v6462_v59 = vld [vmem:[#allocation4 + $0x654] ss:$56 sps:$4 sm:$0xff]  }
 0x296   :  { %3492 = vmatpush1.bf16.msra.mxu0 %v6397_v28  ;;  %v6457_v28 = vld [vmem:[#allocation4 + $0x648] ss:$56 sps:$4 sm:$0xff]  }
 0x297   :  { %3533 = vmatpush1.bf16.msra.mxu1 %v6400_v29  ;;  %3493 = vmatprep.subr.bf16.mxu0 %v6405_v30  ;;  %v6460_v29 = vld [vmem:[#allocation4 + $0x650] ss:$56 sps:$4 sm:$0xff]   ;;  %v6465_v30 = vld [vmem:[#allocation4 + $0x6bc] ss:$56 sps:$4 sm:$0xff]  }
 0x298   :  { %v6962_v36 = vpop.f32.mrb[12].mxu0  ;;  %3534 = vmatprep.subr.bf16.mxu1 %v6408_v31  ;;  %v6468_v31 = vld [vmem:[#allocation4 + $0x6c4] ss:$56 sps:$4 sm:$0xff]  }
 0x299   :  { %v6964_v42 = vpop.f32.mrb[12].mxu1  ;;  %v6966_v43 = vpop.f32.mrb[13].mxu0 }
 0x29a   :  { %v6968_v44 = vpop.f32.mrb[13].mxu1  ;;  %v2073_v45 = vpop.f32.mrb[14].mxu0  ;;  %3494 = vmatpush1.bf16.msra.mxu0 %v6403_v32  ;;  %v6463_v32 = vld [vmem:[#allocation4 + $0x6b8] ss:$56 sps:$4 sm:$0xff]  }
 0x29b   :  { %v2114_v47 = vpop.f32.mrb[14].mxu1  ;;  %3535 = vmatpush1.bf16.msra.mxu1 %v6406_v33  ;;  %v2074_v48 = vpop.f32.mrb[15].mxu0  ;;  %3495 = vmatprep.subr.bf16.mxu0 %v6411_v34  ;;  %v6466_v33 = vld [vmem:[#allocation4 + $0x6c0] ss:$56 sps:$4 sm:$0xff]   ;;  %v6471_v45 = vld [vmem:[#allocation9 + $0x48] sm:$0xff]  }
 0x29c   :  { %v2115_v55 = vpop.f32.mrb[15].mxu1  ;;  %3536 = vmatprep.subr.bf16.mxu1 %v6414_v41  ;;  %v6469_v34 = vld [vmem:[#allocation9 + $0x40] sm:$0xff]   ;;  %v6473_v47 = vld [vmem:[#allocation9 + $0x50] sm:$0xff]  }
 0x29d   :  { %v6470_v41 = vld [vmem:[#allocation9] sm:$0xff]   ;;  %v6474_v48 = vld [vmem:[#allocation9 + $0x10] sm:$0xff]  }
 0x29e   :  { %3496 = vmatpush1.bf16.msra.mxu0 %v6409_v46  ;;  %v6472_v46 = vld [vmem:[#allocation9 + $0x8] sm:$0xff]   ;;  %v6477_v55 = vld [vmem:[#allocation9 + $0x60] sm:$0xff]  }
 0x29f   :  { %3537 = vmatpush1.bf16.msra.mxu1 %v6412_v49  ;;  %3497 = vmatprep.subr.bf16.mxu0 %v6417_v52  ;;  %v6475_v49 = vld [vmem:[#allocation9 + $0x58] sm:$0xff]  }
 0x2a0   :  { %3538 = vmatprep.subr.bf16.mxu1 %v6420_v56  ;;  %v6476_v52 = vld [vmem:[#allocation9 + $0x18] sm:$0xff]   ;;  %v6478_v56 = vld [vmem:[#allocation9 + $0x20] sm:$0xff]  }
 0x2a2   :  { %3498 = vmatpush1.bf16.msra.mxu0 %v6415_v57  ;;  %v6479_v57 = vld [vmem:[#allocation9 + $0x68] sm:$0xff]  }
 0x2a3   :  { %3539 = vmatpush1.bf16.msra.mxu1 %v6418_v58  ;;  %3499 = vmatprep.subr.bf16.mxu0 %v6423_v62  ;;  %v6480_v58 = vld [vmem:[#allocation9 + $0x28] sm:$0xff]  }
 0x2a4   :  { %3540 = vmatprep.subr.bf16.mxu1 %v6426_v63 }
 0x2a6   :  { %3500 = vmatpush1.bf16.msra.mxu0 %v6421_v1 }
 0x2a7   :  { %3541 = vmatpush1.bf16.msra.mxu1 %v6424_v2  ;;  %3501 = vmatprep.subr.bf16.mxu0 %v6429_v3 }
 0x2a8   :  { %3542 = vmatprep.subr.bf16.mxu1 %v6432_v4  ;;  %v6481_v4 = vld [vmem:[#allocation9 + $0x70] sm:$0xff]  }
 0x2aa   :  { %3502 = vmatpush1.bf16.msra.mxu0 %v6427_v5 }
 0x2ab   :  { %3543 = vmatpush1.bf16.msra.mxu1 %v6430_v6  ;;  %3503 = vmatprep.subr.bf16.mxu0 %v6435_v7 }
 0x2ac   :  { %3544 = vmatprep.subr.bf16.mxu1 %v6438_v8  ;;  %v6482_v8 = vld [vmem:[#allocation9 + $0x30] sm:$0xff]  }
 0x2ae   :  { %3504 = vmatpush1.bf16.msra.mxu0 %v6433_v9 }
 0x2af   :  { %3545 = vmatpush1.bf16.msra.mxu1 %v6436_v10  ;;  %3505 = vmatprep.subr.bf16.mxu0 %v6441_v13  ;;  %v6483_v10 = vld [vmem:[#allocation9 + $0x78] sm:$0xff]  }
 0x2b0   :  { %3546 = vmatprep.subr.bf16.mxu1 %v6444_v16  ;;  %v6484_v13 = vld [vmem:[#allocation9 + $0x38] sm:$0xff]   ;;  %v6485_v16 = vld [vmem:[#allocation9 + $0xc0] sm:$0xff]  }
 0x2b2   :  { %3506 = vmatpush1.bf16.msra.mxu0 %v6439_v17  ;;  %v6487_v17 = vld [vmem:[#allocation9 + $0x80] sm:$0xff]  }
 0x2b3   :  { %3547 = vmatpush1.bf16.msra.mxu1 %v6442_v18  ;;  %3507 = vmatprep.subr.bf16.mxu0 %v6447_v19  ;;  %v6489_v18 = vld [vmem:[#allocation9 + $0xc8] sm:$0xff]  }
 0x2b4   :  { %3548 = vmatprep.subr.bf16.mxu1 %v6450_v20  ;;  %v6491_v19 = vld [vmem:[#allocation9 + $0x88] sm:$0xff]   ;;  %v6495_v20 = vld [vmem:[#allocation9 + $0x90] sm:$0xff]  }
 0x2b6   :  { %3508 = vmatpush1.bf16.msra.mxu0 %v6445_v21  ;;  %v6497_v21 = vld [vmem:[#allocation9 + $0xd8] sm:$0xff]  }
 0x2b7   :  { %3549 = vmatpush1.bf16.msra.mxu1 %v6448_v22  ;;  %3509 = vmatprep.subr.bf16.mxu0 %v6453_v23  ;;  %v6499_v22 = vld [vmem:[#allocation9 + $0x98] sm:$0xff]   ;;  %v6501_v23 = vld [vmem:[#allocation9 + $0xe0] sm:$0xff]  }
 0x2b8   :  { %3550 = vmatprep.subr.bf16.mxu1 %v6456_v24  ;;  %v6503_v24 = vld [vmem:[#allocation9 + $0xa0] sm:$0xff]  }
 0x2ba   :  { %3510 = vmatpush1.bf16.msra.mxu0 %v6451_v25  ;;  %v6505_v25 = vld [vmem:[#allocation9 + $0xe8] sm:$0xff]  }
 0x2bb   :  { %3551 = vmatpush1.bf16.msra.mxu1 %v6454_v26  ;;  %3511 = vmatprep.subr.bf16.mxu0 %v6459_v27  ;;  %v6507_v26 = vld [vmem:[#allocation9 + $0xa8] sm:$0xff]  }
 0x2bc   :  { %3552 = vmatprep.subr.bf16.mxu1 %v6462_v59 }
 0x2be   :  { %3512 = vmatpush1.bf16.msra.mxu0 %v6457_v28 }
 0x2bf   :  { %3553 = vmatpush1.bf16.msra.mxu1 %v6460_v29  ;;  %3513 = vmatprep.subr.bf16.mxu0 %v6465_v30 }
 0x2c0   :  { %3554 = vmatprep.subr.bf16.mxu1 %v6468_v31 }
 0x2c2   :  { %3514 = vmatpush1.bf16.msra.mxu0 %v6463_v32 }
 0x2c3   :  { %3555 = vmatpush1.bf16.msra.mxu1 %v6466_v33  ;;  %5577 = vmatprep.subr.bf16.mxu0 %v6469_v34  ;;  %v6509_v34 = vld [vmem:[#allocation9 + $0xf0] sm:$0xff]  }
 0x2c4   :  { %5599 = vmatprep.subr.bf16.mxu1 %v6485_v16 }
 0x2c5   :  { %5424 = vmatmul.mubr.msk.bf16.vlgmr.msra.gmra.mrb[28].mxu0 %vm6864_vm5, %v6709_v61 }
 0x2c6   :  { %5428 = vmatmul.mubr.msk.bf16.vlgmr.msra.gmra.mrb[28].mxu1 %vm6864_vm5, %v6709_v61  ;;  %5578 = vmatpush3.bf16.msra.mxu0 %v6470_v41 }
 0x2c7   :  { %5579 = vmatprep.subr.bf16.mxu0 %v6471_v45  ;;  %5600 = vmatpush3.bf16.msra.mxu1 %v6487_v17 }
 0x2c8   :  { %5601 = vmatprep.subr.bf16.mxu1 %v6489_v18 }
 0x2ca   :  { %5580 = vmatpush3.bf16.msra.mxu0 %v6472_v46 }
 0x2cb   :  { %5581 = vmatprep.subr.bf16.mxu0 %v6473_v47  ;;  %5602 = vmatpush3.bf16.msra.mxu1 %v6491_v19  ;;  %v6511_v47 = vld [vmem:[#allocation9 + $0xb0] sm:$0xff]  }
 0x2ce   :  { %5582 = vmatpush3.bf16.msra.mxu0 %v6474_v48 }
 0x2cf   :  { %5583 = vmatprep.subr.bf16.mxu0 %v6475_v49  ;;  %v6515_v49 = vld [vmem:[#allocation9 + $0xb8] sm:$0xff]  }
 0x2d2   :  { %5584 = vmatpush3.bf16.msra.mxu0 %v6476_v52 }
 0x2d3   :  { %5585 = vmatprep.subr.bf16.mxu0 %v6477_v55 }
 0x2d6   :  { %5586 = vmatpush3.bf16.msra.mxu0 %v6478_v56 }
 0x2d7   :  { %5587 = vmatprep.subr.bf16.mxu0 %v6479_v57 }
 0x2d8   :  { %v6976_v60 = vpop.f32.mrb[16].mxu0 }
 0x2d9   :  { %v3312_v62 = vpop.f32.mrb[16].mxu1  ;;  %v6978_v63 = vpop.f32.mrb[17].mxu0 }
 0x2da   :  { %v6981_v1 = vadd.f32 %v3312_v62, %v6922_v50  ;;  %v3314_v2 = vpop.f32.mrb[17].mxu1  ;;  %v2155_v3 = vpop.f32.mrb[18].mxu0  ;;  %5588 = vmatpush3.bf16.msra.mxu0 %v6480_v58  ;;  %v6486_v50 = vld [vmem:[#allocation9 + $0x140] sm:$0xff]  }
 0x2db   :  { %v6984_v5 = vadd.f32 %v3314_v2, %v6926_v53  ;;  %v3316_v6 = vpop.f32.mrb[18].mxu1  ;;  %v2156_v7 = vpop.f32.mrb[19].mxu0  ;;  %5589 = vmatprep.subr.bf16.mxu0 %v6481_v4  ;;  %v6493_v53 = vld [vmem:[#allocation9 + $0xd0] sm:$0xff]  }
 0x2dc   :  { %v3317_v9 = vpop.f32.mrb[19].mxu1  ;;  %5603 = vmatprep.subr.bf16.mxu1 %v6493_v53 }
 0x2dd   :  { %5604 = vmatpush3.bf16.msra.mxu1 %v6495_v20 }
 0x2de   :  { %5590 = vmatpush3.bf16.msra.mxu0 %v6482_v8  ;;  %5605 = vmatprep.subr.bf16.mxu1 %v6497_v21  ;;  %v6490_v21 = vld [vmem:[#allocation9 + $0x148] sm:$0xff]  }
 0x2df   :  { %5591 = vmatprep.subr.bf16.mxu0 %v6483_v10 }
 0x2e1   :  { %5606 = vmatpush3.bf16.msra.mxu1 %v6499_v22  ;;  %v6492_v22 = vld [vmem:[#allocation9 + $0x108] sm:$0xff]  }
 0x2e2   :  { %5592 = vmatpush3.bf16.msra.mxu0 %v6484_v13  ;;  %5607 = vmatprep.subr.bf16.mxu1 %v6501_v23  ;;  %v6494_v23 = vld [vmem:[#allocation9 + $0x150] sm:$0xff]  }
 0x2e3   :  { %5621 = vmatprep.subr.bf16.mxu0 %v6486_v50 }
 0x2e5   :  { %5608 = vmatpush3.bf16.msra.mxu1 %v6503_v24  ;;  %v6496_v24 = vld [vmem:[#allocation9 + $0x110] sm:$0xff]  }
 0x2e6   :  { %5609 = vmatprep.subr.bf16.mxu1 %v6505_v25  ;;  %v6498_v25 = vld [vmem:[#allocation9 + $0x158] sm:$0xff]  }
 0x2e9   :  { %5610 = vmatpush3.bf16.msra.mxu1 %v6507_v26  ;;  %v6500_v26 = vld [vmem:[#allocation9 + $0x118] sm:$0xff]  }
 0x2ea   :  { %5611 = vmatprep.subr.bf16.mxu1 %v6509_v34  ;;  %v6514_v34 = vld [vmem:[#allocation9 + $0x178] sm:$0xff]  }
 0x2ed   :  { %5612 = vmatpush3.bf16.msra.mxu1 %v6511_v47  ;;  %v3587_v47 = vsub.s32 4, %v6839_v35 }
 0x318   :  { %v3353_v27 = vpop.f32.mrb[20].mxu0 }
 0x319   :  { %v3354_v59 = vadd.f32 %v3353_v27, %v6924_v51  ;;  %v3394_v28 = vpop.f32.mrb[20].mxu1  ;;  %v3355_v29 = vpop.f32.mrb[21].mxu0  ;;  %v6513_v51 = vld [vmem:[#allocation9 + $0xf8] sm:$0xff]   ;;  %v6502_v27 = vld [vmem:[#allocation9 + $0x160] sm:$0xff]  }
 0x31a   :  { %v6988_v30 = vadd.f32 %v3394_v28, %v6942_v11  ;;  %v6991_v31 = vadd.f32 %v3355_v29, %v6928_v54  ;;  %v3396_v32 = vpop.f32.mrb[21].mxu1  ;;  %v3357_v33 = vpop.f32.mrb[22].mxu0  ;;  %5613 = vmatprep.subr.bf16.mxu1 %v6513_v51  ;;  %v3599_v54 = vsub.s32 7, %v6839_v35  ;;  %v7001_v11 = vld [vmem:[%s7230_s5] sm:$0xff]  ;;  %v6506_v28 = vld [vmem:[#allocation9 + $0x168] sm:$0xff]   ;;  %v3595_v51 = vsub.s32 6, %v6839_v35 }
 0x31b   :  { %v6994_v41 = vadd.f32 %v3396_v32, %v6946_v14  ;;  %v3398_v45 = vpop.f32.mrb[22].mxu1  ;;  %v3358_v46 = vpop.f32.mrb[23].mxu0  ;;  %5614 = vmatpush3.bf16.msra.mxu1 %v6515_v49  ;;  %v7006_v14 = vld [vmem:[%s7230_s5 + $0x8] sm:$0x3f]  ;;  %v3572_v52 = vrot.slane %v7001_v11, %v6845_v37  ;;  %v3576_v55 = vrot.slane %v7001_v11, %v6851_v39  ;;  %v3580_v62 = vrot.slane %v7001_v11, %v6848_v38  ;;  %v6510_v32 = vld [vmem:[#allocation9 + $0x170] sm:$0xff]  }
 0x31c   :  { %v3399_v48 = vpop.f32.mrb[23].mxu1  ;;  %5727 = vmatprep.subr.bf16.mxu1 %v6708_v0  ;;  %v3604_v57 = vrot.slane %v7006_v14, %v6845_v37  ;;  %v3600_v58 = vrot.slane %v7001_v11, %v3599_v54  ;;  %v3608_v6 = vrot.slane %v7006_v14, %v6851_v39  ;;  %v6508_v29 = vld [vmem:[#allocation9 + $0x128] sm:$0xff]   ;;  %v6512_v33 = vld [vmem:[#allocation9 + $0x130] sm:$0xff]   ;;  %v6516_v45 = vld [vmem:[#allocation9 + $0x138] sm:$0xff]   ;;  %v3584_v49 = vrot.slane %v7001_v11, %v6854_v40 }
 0x31d   :  { %v3639_v50 = vadd.f32 %v3572_v52, %v6981_v1  ;;  %v7027_v53 = vadd.f32 %v3580_v62, %v3354_v59  ;;  %v6504_v59 = vld [vmem:[#allocation9 + $0x120] sm:$0xff]   ;;  %v3591_v48 = vsub.s32 5, %v6839_v35  ;;  %v3612_v54 = vrot.slane %v7006_v14, %v6848_v38 }
 0x31e   :  { %v6517_v46 = vld [vmem:[#allocation7 + $0x40] sm:$0xff]   ;;  %v3588_v52 = vrot.slane %v7001_v11, %v3587_v47  ;;  %v3596_v62 = vrot.slane %v7001_v11, %v3595_v51  ;;  %v6540_v51 = vld [vmem:[#allocation7 + $0x38] sm:$0xff]  }
 0x31f   :  { %v6529_v1 = vld [vmem:[#allocation7 + $0x60] sm:$0xff]  }
 0x358   :  { %v3435_v56 = vpop.f32.mrb[24].mxu0 }
 0x359   :  { %v7018_v2 = vadd.f32 %v3435_v56, %v6944_v12  ;;  %v3476_v3 = vpop.f32.mrb[24].mxu1  ;;  %v3437_v4 = vpop.f32.mrb[25].mxu0  ;;  %v3640_v12 = vadd.f32 %v3576_v55, %v6984_v5  ;;  %v6488_v5 = vld [vmem:[#allocation9 + $0x100] sm:$0xff]   ;;  %v3592_v55 = vrot.slane %v7001_v11, %v3591_v48  ;;  %v3643_v11 = vadd.f32 %v3588_v52, %v6988_v30  ;;  %v6545_v52 = vld [vmem:[#allocation7 + $0xc8] sm:$0xff]  }
 0x35a   :  { %v3477_v7 = vadd.f32 %v3476_v3, %v6962_v36  ;;  %v3438_v8 = vadd.f32 %v3437_v4, %v6948_v15  ;;  %v3478_v9 = vpop.f32.mrb[25].mxu1  ;;  %v3439_v10 = vpop.f32.mrb[26].mxu0 }
 0x35b   :  { %v3479_v37 = vadd.f32 %v3478_v9, %v6966_v43  ;;  %v3480_v13 = vpop.f32.mrb[26].mxu1  ;;  %v3440_v16 = vpop.f32.mrb[27].mxu0  ;;  %v3642_v10 = vadd.f32 %v3584_v49, %v6991_v31  ;;  %v6542_v49 = vld [vmem:[#allocation7 + $0x140] sm:$0xff]   ;;  %v6554_v43 = vld [vmem:[#allocation7 + $0x158] sm:$0xff]  }
 0x35c   :  { %v3647_v17 = vadd.f32 %v3604_v57, %v3477_v7  ;;  %v3646_v18 = vadd.f32 %v3600_v58, %v3438_v8  ;;  %v3481_v19 = vpop.f32.mrb[27].mxu1  ;;  %v3620_v57 = vrot.slane %v7006_v14, %v3587_v47  ;;  %v3616_v58 = vrot.slane %v7006_v14, %v6854_v40  ;;  %v6541_v47 = vld [vmem:[#allocation7 + $0xc0] sm:$0xff]  }
 0x35d   :  { %v7029_v39 = vadd.f32 %v3608_v6, %v3479_v37  ;;  %v3624_v6 = vrot.slane %v7006_v14, %v3591_v48  ;;  %v6579_v19 = vld [vmem:[#allocation7 + $0x1b0] sm:$0xff]  }
 0x35e   :  { %v3653_v36 = vmax.f32 %v3639_v50, %v3646_v18  ;;  %v3654_v20 = vmax.f32 %v3640_v12, %v3647_v17  ;;  %v6575_v18 = vld [vmem:[#allocation7 + $0x190] sm:$0xff]  }
 0x35f   :  { %v3655_v15 = vmax.f32 %v7027_v53, %v7029_v39  ;;  %v6519_v39 = vld [vmem:[#allocation7] sm:$0xff]   ;;  %v6578_v53 = vld [vmem:[#allocation7 + $0x1a8] sm:$0xff]  }
 0x360   :  { %vm7033_vm6 = vcmp.gt.f32.partialorder %v3653_v36, 1.0  ;;  %vm7037_vm7 = vcmp.gt.f32.partialorder %v3654_v20, 1.0  ;;  %v6520_v36 = vld [vmem:[#allocation7 + $0x48] sm:$0xff]  }
 0x361   :  { %vm5494_vm8 = vmpackc.low %vm7033_vm6, %vm7033_vm6  ;;  %vm7088_vm10 = vcmp.gt.f32.partialorder %v3655_v15, 1.0  ;;  %v6521_v20 = vld [vmem:[#allocation9 + $0x188] sm:$0xff]  }
 0x362   :  { %vm5492_vm9 = vmpackc.low %vm7037_vm7, %vm7037_vm7  ;;  %v6522_v15 = vld [vmem:[#allocation7 + $0x8] sm:$0xff]  }
 0x363   :  { %5493 = vmatprep.mubr.msk.bf16.mxu0 %vm5492_vm9, %v6709_v61  ;;  %vm5498_vm15 = vmpackc.low %vm7088_vm10, %vm7088_vm10 }
 0x364   :  { %5495 = vmatmul.mubr.msk.bf16.vlgmr.msra.gmra.mrb[32].mxu0 %vm5494_vm8, %v6709_v61 }
 0x365   :  { %5622 = vmatpush3.bf16.msra.mxu0 %v6488_v5  ;;  %v6523_v5 = vld [vmem:[#allocation7 + $0x50] sm:$0xff]  }
 0x366   :  { %5623 = vmatprep.subr.bf16.mxu0 %v6490_v21  ;;  %v6524_v21 = vld [vmem:[#allocation9 + $0x190] sm:$0xff]  }
 0x369   :  { %5624 = vmatpush3.bf16.msra.mxu0 %v6492_v22  ;;  %v6525_v22 = vld [vmem:[#allocation7 + $0x10] sm:$0xff]  }
 0x36a   :  { %5625 = vmatprep.subr.bf16.mxu0 %v6494_v23  ;;  %v6526_v23 = vld [vmem:[#allocation7 + $0x58] sm:$0xff]  }
 0x36d   :  { %5626 = vmatpush3.bf16.msra.mxu0 %v6496_v24  ;;  %v6527_v24 = vld [vmem:[#allocation9 + $0x198] sm:$0xff]  }
 0x36e   :  { %5627 = vmatprep.subr.bf16.mxu0 %v6498_v25  ;;  %v6528_v25 = vld [vmem:[#allocation7 + $0x18] sm:$0xff]  }
 0x371   :  { %5628 = vmatpush3.bf16.msra.mxu0 %v6500_v26  ;;  %v6530_v26 = vld [vmem:[#allocation9 + $0x1a0] sm:$0xff]  }
 0x372   :  { %5629 = vmatprep.subr.bf16.mxu0 %v6502_v27  ;;  %v6531_v27 = vld [vmem:[#allocation7 + $0x20] sm:$0xff]  }
 0x375   :  { %5630 = vmatpush3.bf16.msra.mxu0 %v6504_v59  ;;  %v6532_v59 = vld [vmem:[#allocation7 + $0x68] sm:$0xff]  }
 0x376   :  { %5631 = vmatprep.subr.bf16.mxu0 %v6506_v28  ;;  %v6533_v28 = vld [vmem:[#allocation9 + $0x1a8] sm:$0xff]  }
 0x379   :  { %5632 = vmatpush3.bf16.msra.mxu0 %v6508_v29  ;;  %v6534_v29 = vld [vmem:[#allocation7 + $0x28] sm:$0xff]  }
 0x37a   :  { %5633 = vmatprep.subr.bf16.mxu0 %v6510_v32  ;;  %v6535_v32 = vld [vmem:[#allocation7 + $0x70] sm:$0xff]  }
 0x37d   :  { %5634 = vmatpush3.bf16.msra.mxu0 %v6512_v33  ;;  %v6536_v33 = vld [vmem:[#allocation9 + $0x1b0] sm:$0xff]  }
 0x37e   :  { %5635 = vmatprep.subr.bf16.mxu0 %v6514_v34  ;;  %v6537_v34 = vld [vmem:[#allocation7 + $0x30] sm:$0xff]  }
 0x381   :  { %5636 = vmatpush3.bf16.msra.mxu0 %v6516_v45  ;;  %v6538_v45 = vld [vmem:[#allocation7 + $0x78] sm:$0xff]  }
 0x382   :  { %5652 = vmatprep.subr.bf16.mxu0 %v6517_v46  ;;  %v6539_v46 = vld [vmem:[#allocation9 + $0x1b8] sm:$0xff]  }
 0x398   :  { %v3517_v56 = vpop.f32.mrb[28].mxu0 }
 0x399   :  { %v3518_v35 = vadd.f32 %v3517_v56, %v6964_v42  ;;  %v3558_v3 = vpop.f32.mrb[28].mxu1  ;;  %v3519_v4 = vpop.f32.mrb[29].mxu0  ;;  %v3644_v42 = vadd.f32 %v3592_v55, %v6994_v41  ;;  %v6544_v55 = vld [vmem:[#allocation7 + $0x100] sm:$0xff]   ;;  %v6546_v56 = vld [vmem:[#allocation7 + $0x148] sm:$0xff]  }
 0x39a   :  { %v3559_v38 = vadd.f32 %v3558_v3, %v6976_v60  ;;  %v3520_v7 = vadd.f32 %v3519_v4, %v6968_v44  ;;  %v3560_v8 = vpop.f32.mrb[29].mxu1  ;;  %v3521_v9 = vpop.f32.mrb[30].mxu0  ;;  %v7081_v60 = vadd.f32 %v3596_v62, %v7018_v2  ;;  %v6518_v2 = vld [vmem:[#allocation9 + $0x180] sm:$0xff]   ;;  %v6548_v62 = vld [vmem:[#allocation7 + $0x108] sm:$0xff]   ;;  %v6551_v3 = vld [vmem:[#allocation7 + $0x90] sm:$0xff]  }
 0x39b   :  { %v3649_v37 = vadd.f32 %v3612_v54, %v3518_v35  ;;  %v3561_v13 = vadd.f32 %v3560_v8, %v6978_v63  ;;  %v3562_v40 = vpop.f32.mrb[30].mxu1  ;;  %v3522_v16 = vpop.f32.mrb[31].mxu0  ;;  %v6543_v54 = vld [vmem:[#allocation7 + $0x80] sm:$0xff]   ;;  %v6550_v35 = vld [vmem:[#allocation7 + $0x150] sm:$0xff]   ;;  %v6553_v4 = vld [vmem:[#allocation7 + $0xd8] sm:$0xff]  }
 0x39c   :  { %v3651_v50 = vadd.f32 %v3620_v57, %v3559_v38  ;;  %v3650_v12 = vadd.f32 %v3616_v58, %v3520_v7  ;;  %v3563_v14 = vpop.f32.mrb[31].mxu1  ;;  %v6547_v57 = vld [vmem:[#allocation7 + $0x88] sm:$0xff]   ;;  %v6549_v58 = vld [vmem:[#allocation7 + $0xd0] sm:$0xff]   ;;  %v6555_v38 = vld [vmem:[#allocation7 + $0x98] sm:$0xff]  }
 0x39d   :  { %v7083_v44 = vadd.f32 %v3624_v6, %v3561_v13  ;;  %v3656_v17 = vmax.f32 %v3642_v10, %v3649_v37  ;;  %v6552_v6 = vld [vmem:[#allocation7 + $0x110] sm:$0xff]   ;;  %v6557_v7 = vld [vmem:[#allocation7 + $0xe0] sm:$0xff]   ;;  %v6556_v8 = vld [vmem:[#allocation7 + $0x118] sm:$0xff]  }
 0x39e   :  { %v3657_v31 = vmax.f32 %v3643_v11, %v3650_v12  ;;  %v3658_v30 = vmax.f32 %v3644_v42, %v3651_v50  ;;  %v6558_v9 = vld [vmem:[#allocation7 + $0x160] sm:$0xff]   ;;  %v6561_v37 = vld [vmem:[#allocation7 + $0xe8] sm:$0xff]   ;;  %v6565_v11 = vld [vmem:[#allocation7 + $0xf0] sm:$0xff]  }
 0x39f   :  { %v3659_v41 = vmax.f32 %v7081_v60, %v7083_v44  ;;  %vm7094_vm11 = vcmp.gt.f32.partialorder %v3656_v17, 1.0  ;;  %v6559_v10 = vld [vmem:[#allocation7 + $0xa0] sm:$0xff]   ;;  %v6562_v40 = vld [vmem:[#allocation7 + $0x168] sm:$0xff]   ;;  %v6566_v50 = vld [vmem:[#allocation7 + $0x170] sm:$0xff]  }
 0x3a0   :  { %vm7098_vm12 = vcmp.gt.f32.partialorder %v3657_v31, 1.0  ;;  %vm5496_vm13 = vmpackc.low %vm7094_vm11, %vm7094_vm11  ;;  %vm7105_vm14 = vcmp.gt.f32.partialorder %v3658_v30, 1.0  ;;  %v6560_v13 = vld [vmem:[#allocation7 + $0x120] sm:$0xff]   ;;  %v6563_v16 = vld [vmem:[#allocation7 + $0xa8] sm:$0xff]  }
 0x3a1   :  { %5497 = vmatprep.mubr.msk.bf16.mxu1 %vm5496_vm13, %v6709_v61  ;;  %vm5502_vm0 = vmpackc.low %vm7098_vm12, %vm7098_vm12  ;;  %vm7160_vm3 = vcmp.gt.f32.partialorder %v3659_v41, 1.0  ;;  %v6564_v42 = vld [vmem:[#allocation7 + $0x128] sm:$0xff]   ;;  %v6567_v12 = vld [vmem:[#allocation7 + $0xb0] sm:$0xff]  }
 0x3a2   :  { %5499 = vmatmul.mubr.msk.bf16.vlgmr.msra.gmra.mrb[32].mxu1 %vm5498_vm15, %v6709_v61  ;;  %vm5500_vm1 = vmpackc.low %vm7105_vm14, %vm7105_vm14  ;;  %v6569_v14 = vld [vmem:[#allocation7 + $0xf8] sm:$0xff]   ;;  %v6568_v60 = vld [vmem:[#allocation7 + $0x130] sm:$0xff]  }
 0x3a3   :  { %5728 = vmatpush3.bf16.msra.mxu1 %v6518_v2  ;;  %5743 = vmatprep.mubr.msk.bf16.mxu1 %vm6710_vm2, %v6708_v0  ;;  %vm5504_vm4 = vmpackc.low %vm7160_vm3, %vm7160_vm3  ;;  %v6570_v44 = vld [vmem:[#allocation7 + $0x178] sm:$0xff]   ;;  %v6573_v30 = vld [vmem:[#allocation7 + $0x180] sm:$0xff]  }
 0x3a4   :  { %5501 = vmatprep.mubr.msk.bf16.mxu0 %vm5500_vm1, %v6709_v61  ;;  %5729 = vmatprep.subr.bf16.mxu1 %v6708_v0  ;;  %v6571_v17 = vld [vmem:[#allocation7 + $0xb8] sm:$0xff]   ;;  %v6574_v41 = vld [vmem:[#allocation7 + $0x188] sm:$0xff]   ;;  %v6577_v2 = vld [vmem:[#allocation7 + $0x1a0] sm:$0xff]  }
 0x3a5   :  { %5503 = vmatmul.mubr.msk.bf16.vlgmr.msra.gmra.mrb[36].mxu0 %vm5502_vm0, %v6709_v61  ;;  %v6572_v31 = vld [vmem:[#allocation7 + $0x138] sm:$0xff]  }
 0x3a6   :  { %5653 = vmatpush3.bf16.msra.mxu0 %v6519_v39  ;;  %5563 = vmatprep.mubr.msk.bf16.mxu0 %vm5492_vm9, %v6709_v61  ;;  %v6576_v63 = vld [vmem:[#allocation7 + $0x198] sm:$0xff]  }
 0x3a7   :  { %5654 = vmatprep.subr.bf16.mxu0 %v6520_v36  ;;  %5730 = vmatpush3.bf16.msra.mxu1 %v6521_v20  ;;  %v6580_v39 = vld [vmem:[#allocation7 + $0x1b8] sm:$0xff]  }
 0x3a8   :  { %5731 = vmatprep.subr.bf16.mxu1 %v6708_v0 }
 0x3aa   :  { %5655 = vmatpush3.bf16.msra.mxu0 %v6522_v15 }
 0x3ab   :  { %5656 = vmatprep.subr.bf16.mxu0 %v6523_v5  ;;  %5732 = vmatpush3.bf16.msra.mxu1 %v6524_v21 }
 0x3ac   :  { %5733 = vmatprep.subr.bf16.mxu1 %v6708_v0 }
 0x3ae   :  { %5657 = vmatpush3.bf16.msra.mxu0 %v6525_v22 }
 0x3af   :  { %5658 = vmatprep.subr.bf16.mxu0 %v6526_v23  ;;  %5734 = vmatpush3.bf16.msra.mxu1 %v6527_v24 }
 0x3b0   :  { %5735 = vmatprep.subr.bf16.mxu1 %v6708_v0 }
 0x3b2   :  { %5659 = vmatpush3.bf16.msra.mxu0 %v6528_v25 }
 0x3b3   :  { %5660 = vmatprep.subr.bf16.mxu0 %v6529_v1  ;;  %5736 = vmatpush3.bf16.msra.mxu1 %v6530_v26 }
 0x3b4   :  { %5737 = vmatprep.subr.bf16.mxu1 %v6708_v0 }
 0x3b6   :  { %5661 = vmatpush3.bf16.msra.mxu0 %v6531_v27 }
 0x3b7   :  { %5662 = vmatprep.subr.bf16.mxu0 %v6532_v59  ;;  %5738 = vmatpush3.bf16.msra.mxu1 %v6533_v28 }
 0x3b8   :  { %5739 = vmatprep.subr.bf16.mxu1 %v6708_v0 }
 0x3ba   :  { %5663 = vmatpush3.bf16.msra.mxu0 %v6534_v29 }
 0x3bb   :  { %5664 = vmatprep.subr.bf16.mxu0 %v6535_v32  ;;  %5740 = vmatpush3.bf16.msra.mxu1 %v6536_v33 }
 0x3bc   :  { %5741 = vmatprep.subr.bf16.mxu1 %v6708_v0 }
 0x3be   :  { %5665 = vmatpush3.bf16.msra.mxu0 %v6537_v34 }
 0x3bf   :  { %5666 = vmatprep.subr.bf16.mxu0 %v6538_v45  ;;  %5742 = vmatpush3.bf16.msra.mxu1 %v6539_v46 }
 0x3c0   :  { %5674 = vmatprep.subr.bf16.mxu1 %v6541_v47 }
 0x3c2   :  { %5667 = vmatpush3.bf16.msra.mxu0 %v6540_v51  ;;  %5744 = vmatmul.mubr.msk.bf16.vlgmr.msra.gmra.mrb[36].mxu1 %vm5504_vm4, %v6709_v61 }
 0x3c3   :  { %5696 = vmatprep.subr.bf16.mxu0 %v6542_v49  ;;  %5675 = vmatpush3.bf16.msra.mxu1 %v6543_v54 }
 0x3c4   :  { %5567 = vmatprep.mubr.msk.bf16.mxu1 %vm5496_vm13, %v6709_v61  ;;  %5676 = vmatprep.subr.bf16.mxu1 %v6545_v52 }
 0x3c5   :  { %5565 = vmatmul.mubr.msk.bf16.vlgmr.msra.gmra.mrb[40].mxu0 %vm5494_vm8, %v6709_v61 }
 0x3c6   :  { %5697 = vmatpush3.bf16.msra.mxu0 %v6544_v55  ;;  %5571 = vmatprep.mubr.msk.bf16.mxu0 %vm5500_vm1, %v6709_v61 }
 0x3c7   :  { %5698 = vmatprep.subr.bf16.mxu0 %v6546_v56  ;;  %5677 = vmatpush3.bf16.msra.mxu1 %v6547_v57 }
 0x3c8   :  { %5678 = vmatprep.subr.bf16.mxu1 %v6549_v58 }
 0x3ca   :  { %5699 = vmatpush3.bf16.msra.mxu0 %v6548_v62 }
 0x3cb   :  { %5700 = vmatprep.subr.bf16.mxu0 %v6550_v35  ;;  %5679 = vmatpush3.bf16.msra.mxu1 %v6551_v3 }
 0x3cc   :  { %5680 = vmatprep.subr.bf16.mxu1 %v6553_v4 }
 0x3ce   :  { %5701 = vmatpush3.bf16.msra.mxu0 %v6552_v6 }
 0x3cf   :  { %5702 = vmatprep.subr.bf16.mxu0 %v6554_v43  ;;  %5681 = vmatpush3.bf16.msra.mxu1 %v6555_v38 }
 0x3d0   :  { %5682 = vmatprep.subr.bf16.mxu1 %v6557_v7 }
 0x3d2   :  { %5703 = vmatpush3.bf16.msra.mxu0 %v6556_v8 }
 0x3d3   :  { %5704 = vmatprep.subr.bf16.mxu0 %v6558_v9  ;;  %5683 = vmatpush3.bf16.msra.mxu1 %v6559_v10  ;;  %v5576_v9 = vld [vmem:[%s7233_s8] ss:$0 sm:$0xff] }
 0x3d4   :  { %5684 = vmatprep.subr.bf16.mxu1 %v6561_v37 }
 0x3d6   :  { %5705 = vmatpush3.bf16.msra.mxu0 %v6560_v13 }
 0x3d7   :  { %5706 = vmatprep.subr.bf16.mxu0 %v6562_v40  ;;  %5685 = vmatpush3.bf16.msra.mxu1 %v6563_v16 }
 0x3d8   :  { %5686 = vmatprep.subr.bf16.mxu1 %v6565_v11 }
 0x3da   :  { %5707 = vmatpush3.bf16.msra.mxu0 %v6564_v42 }
 0x3db   :  { %5708 = vmatprep.subr.bf16.mxu0 %v6566_v50  ;;  %5687 = vmatpush3.bf16.msra.mxu1 %v6567_v12 }
 0x3dc   :  { %5688 = vmatprep.subr.bf16.mxu1 %v6569_v14 }
 0x3de   :  { %5709 = vmatpush3.bf16.msra.mxu0 %v6568_v60 }
 0x3df   :  { %5710 = vmatprep.subr.bf16.mxu0 %v6570_v44  ;;  %5689 = vmatpush3.bf16.msra.mxu1 %v6571_v17 }
 0x3e0   :  { %5747 = vmatprep.subr.bf16.mxu1 %v6708_v0 }
 0x3e2   :  { %5711 = vmatpush3.bf16.msra.mxu0 %v6572_v31  ;;  %5569 = vmatmul.mubr.msk.bf16.vlgmr.msra.gmra.mrb[40].mxu1 %vm5498_vm15, %v6709_v61 }
 0x3e3   :  { %5748 = vmatpush3.bf16.msra.mxu1 %v6573_v30  ;;  %5763 = vmatprep.mubr.msk.bf16.mxu1 %vm6710_vm2, %v6708_v0 }
 0x3e4   :  { %5749 = vmatprep.subr.bf16.mxu1 %v6708_v0 }
 0x3e5   :  { %5573 = vmatmul.mubr.msk.bf16.vlgmr.msra.gmra.mrb[44].mxu0 %vm5502_vm0, %v6709_v61 }
 0x3e7   :  { %5750 = vmatpush3.bf16.msra.mxu1 %v6574_v41 }
 0x3e8   :  { %5751 = vmatprep.subr.bf16.mxu1 %v6708_v0 }
 0x3eb   :  { %5752 = vmatpush3.bf16.msra.mxu1 %v6575_v18 }
 0x3ec   :  { %5753 = vmatprep.subr.bf16.mxu1 %v6708_v0 }
 0x3ef   :  { %5754 = vmatpush3.bf16.msra.mxu1 %v6576_v63 }
 0x3f0   :  { %5755 = vmatprep.subr.bf16.mxu1 %v6708_v0 }
 0x3f3   :  { %5756 = vmatpush3.bf16.msra.mxu1 %v6577_v2 }
 0x3f4   :  { %5757 = vmatprep.subr.bf16.mxu1 %v6708_v0 }
 0x3f7   :  { %5758 = vmatpush3.bf16.msra.mxu1 %v6578_v53 }
 0x3f8   :  { %5759 = vmatprep.subr.bf16.mxu1 %v6708_v0 }
 0x3fb   :  { %5760 = vmatpush3.bf16.msra.mxu1 %v6579_v19 }
 0x3fc   :  { %5761 = vmatprep.subr.bf16.mxu1 %v6708_v0 }
 0x3ff   :  { %5762 = vmatpush3.bf16.msra.mxu1 %v6580_v39 }
 0x402   :  { %5764 = vmatmul.mubr.msk.bf16.vlgmr.msra.gmra.mrb[44].mxu1 %vm5504_vm4, %v6709_v61 }
 0x437   :  { %v5593_v36 = vpop.f32.mrb[32].mxu0 }
 0x438   :  { %v5594_v20 = vpop.f32.mrb[33].mxu0 }
 0x439   :  { %v5595_v15 = vadd.f32 %v5594_v20, %v5593_v36  ;;  %v5596_v5 = vpop.f32.mrb[34].mxu0 }
 0x43a   :  { %v5597_v21 = vpop.f32.mrb[35].mxu0 }
 0x475   :  { %v5615_v22 = vpop.f32.mrb[32].mxu1 }
 0x476   :  { %v5616_v23 = vpop.f32.mrb[33].mxu1 }
 0x477   :  { %v5617_v24 = vadd.f32 %v5616_v23, %v5615_v22  ;;  %v5618_v25 = vpop.f32.mrb[34].mxu1 }
 0x478   :  { %v5637_v1 = vpop.f32.mrb[36].mxu0  ;;  %v5619_v26 = vpop.f32.mrb[35].mxu1 }
 0x479   :  { %v4323_v0 = vadd.f32 %v5617_v24, %v5595_v15  ;;  %v5638_v27 = vpop.f32.mrb[37].mxu0 }
 0x47a   :  { %v5639_v59 = vadd.f32 %v5638_v27, %v5637_v1  ;;  %v5640_v28 = vpop.f32.mrb[38].mxu0 }
 0x47b   :  { %v5641_v29 = vpop.f32.mrb[39].mxu0 }
 0x47c   :  { %v4363_v32 = vadd.f32 %v5639_v59, %v4323_v0 }
 0x495   :  { %v4402_v33 = vpop.f32.mrb[36].mxu1 }
 0x496   :  { %v4403_v34 = vadd.f32 %v4402_v33, %v4363_v32  ;;  %v5745_v61 = vpop.f32.mrb[37].mxu1 }
 0x497   :  { %v4405_v45 = vpop.f32.mrb[38].mxu1 }
 0x498   :  { %v5668_v46 = vpop.f32.mrb[40].mxu0  ;;  %v5746_v47 = vpop.f32.mrb[39].mxu1 }
 0x499   :  { %v5669_v48 = vpop.f32.mrb[41].mxu0 }
 0x49a   :  { %v5670_v51 = vadd.f32 %v5669_v48, %v5668_v46  ;;  %v5671_v49 = vpop.f32.mrb[42].mxu0 }
 0x49b   :  { %v5672_v54 = vpop.f32.mrb[43].mxu0 }
 0x49c   :  { %v4779_v52 = vadd.f32 %v5670_v51, %v4403_v34 }
 0x4b5   :  { %v5690_v55 = vpop.f32.mrb[40].mxu1 }
 0x4b6   :  { %v5691_v56 = vpop.f32.mrb[41].mxu1 }
 0x4b7   :  { %v5692_v57 = vadd.f32 %v5691_v56, %v5690_v55  ;;  %v5693_v58 = vpop.f32.mrb[42].mxu1 }
 0x4b8   :  { %v5712_v62 = vpop.f32.mrb[44].mxu0  ;;  %v5694_v35 = vpop.f32.mrb[43].mxu1 }
 0x4b9   :  { %v4819_v3 = vadd.f32 %v5692_v57, %v4779_v52  ;;  %v5713_v4 = vpop.f32.mrb[45].mxu0 }
 0x4ba   :  { %v5714_v6 = vadd.f32 %v5713_v4, %v5712_v62  ;;  %v5715_v43 = vpop.f32.mrb[46].mxu0 }
 0x4bb   :  { %v5716_v38 = vpop.f32.mrb[47].mxu0 }
 0x4bc   :  { %v4859_v7 = vadd.f32 %v5714_v6, %v4819_v3 }
 0x4d5   :  { %v4898_v8 = vpop.f32.mrb[44].mxu1 }
 0x4d6   :  { %v4899_v10 = vadd.f32 %v4898_v8, %v4859_v7  ;;  %v5765_v37 = vpop.f32.mrb[45].mxu1 }
 0x4d7   :  { %v4901_v13 = vpop.f32.mrb[46].mxu1 }
 0x4d8   :  { %v4911_v40 = vadd.f32 %v5576_v9, %v4899_v10  ;;  %v5766_v16 = vpop.f32.mrb[47].mxu1 }
 0x4da   :  { %4912 = vst [vmem:[%s7234_s9] sm:$0xff] %v4911_v40 }
 0x4db   :  { %4917 = vsyncpa [#allocation3], 1 }
 0x4dc   :  { %4918 = vsyncpa [#allocation5], 1 }
 0x4dd   :  { %4919 = vsyncpa [#allocation8], 1 }

</bundles_post_ra>
